<compile_context>
chip_gen: v5e
topology: v5e:2x2
jax: 0.10.0
libtpu: 0.0.40
codegen_flags: <defaults>
</compile_context>

<pallas_src>
import jax
import jax.numpy as jnp
from jax import lax
from jax.experimental import pallas as pl
from jax.experimental.pallas import tpu as pltpu


def _up_conv_kernel(x_ref, g_ref, seg_ref, segt_ref, p_ref,
                    gamma_ref, beta_ref, out_ref):
    """Fused sub-pixel 3x3 conv + InstanceNorm + style affine + ReLU (TB images/step).

    x_ref    : (TB*H, Kp)  row-tap-folded, zero-padded input (lanes = 3 row taps x
                           (W+2) cols x Cin), matmul dtype (bf16 or f32)
    g_ref    : (Kp, N)     folded sub-pixel conv weights, N = 4*W*Cout
                           (lane n = parity*(W*Cout) + x*Cout + cout)
    seg_ref  : (TB, TB*H)  one-hot image-of-row selector                    (f32)
    segt_ref : (TB*H, TB)  its transpose (image -> rows broadcast back)     (f32)
    p_ref    : (N, N)      per-lane channel-averaging matrix = selt^T selt / (2H*2W)
    gamma_ref: (TB, N)     per-lane AdaIN gamma (pre-broadcast in the wrapper)
    beta_ref : (TB, N)     per-lane AdaIN beta
    out_ref  : (TB*H, N)   lane-dense output slab (f32)
    """
    N = out_ref.shape[1]

    # --- 3x3 conv on the x2-upsampled image: ONE MXU matmul, f32 accumulation ---
    conv = jnp.dot(x_ref[...], g_ref[...],
                   preferred_element_type=jnp.float32)                       # (TB*H, N)
    # (conv bias intentionally omitted: exactly cancelled by the InstanceNorm mean)

    # --- per-image raw moments: one selector matmul over [x | x^2] (aligned concat) ---
    moments = jnp.dot(seg_ref[...],
                      jnp.concatenate([conv, conv * conv], axis=1),
                      preferred_element_type=jnp.float32)                    # (TB, 2N)

    # --- per-lane instance mean / E[x^2] via channel averaging, one-pass variance ---
    p = p_ref[...]
    mean_l = jnp.dot(moments[:, :N], p, preferred_element_type=jnp.float32)  # (TB, N)
    ex2_l = jnp.dot(moments[:, N:], p, preferred_element_type=jnp.float32)   # (TB, N)
    var_l = jnp.maximum(ex2_l - mean_l * mean_l, 0.0)

    # --- AdaIN affine folded into per-lane scale/shift, broadcast back to rows ---
    scale_l = gamma_ref[...] * lax.rsqrt(var_l + 1e-5)                       # (TB, N)
    shift_l = beta_ref[...] - mean_l * scale_l                               # (TB, N)
    rows = jnp.dot(segt_ref[...],
                   jnp.concatenate([scale_l, shift_l], axis=1),
                   preferred_element_type=jnp.float32)                       # (TB*H, 2N)

    out_ref[...] = jnp.maximum(conv * rows[:, :N] + rows[:, N:], 0.0)        # unmasked store


def up_conv_forward(x_nchw, params, conv_w, conv_b, style_w, style_b,
                    *, images_per_step=16, matmul_dtype=jnp.bfloat16):
    """Forward of `up_conv`.  NCHW in / NCHW out, matching the PyTorch module.

    x_nchw : (B, Cin, H, W)    params : (B, P)
    conv_w : (Cout, Cin, 3, 3) conv_b : (Cout,)   (mathematical no-op before IN)
    style_w: (2*Cout, P)       style_b: (2*Cout,)
    returns (B, Cout, 2H, 2W) float32.

    images_per_step: images folded into the matmul M dim per grid step
                     (8 -> M=128 fills v5e's MXU, 16 -> M=256 fills v6e/v7x).
    matmul_dtype   : conv matmul operand dtype (bf16 recommended on v6e/v7x; f32
                     accumulation is always used).
    """
    del conv_b  # exactly cancelled by the InstanceNorm mean subtraction
    B, Cin, H, W = x_nchw.shape
    Cout = conv_w.shape[0]
    N = 4 * W * Cout                   # 4 sub-pixel parities * W * Cout (lane-dense)
    KK = (W + 2) * Cin
    K3 = 3 * KK
    Kp = ((K3 + 127) // 128) * 128     # contraction dim padded to a lane multiple

    # Image-batch tile for the matmul M dimension (largest divisor of B <= target).
    tb = max(t for t in range(1, min(images_per_step, B) + 1) if B % t == 0)
    # TODO(synk): on v7x prefer tb such that B // tb >= 2 so both TensorCores get work.

    # ---- glue: 1-px halo, channels flattened to lanes, 3 row taps folded into K ----
    x = jnp.transpose(x_nchw, (0, 2, 3, 1))                          # (B, H, W, Cin)
    xp = jnp.pad(x, ((0, 0), (1, 1), (1, 1), (0, 0)))                # (B, H+2, W+2, Cin)
    xpf = xp.reshape(B, H + 2, KK)
    xcat = jnp.concatenate([xpf[:, 0:H], xpf[:, 1:H + 1], xpf[:, 2:H + 2]],
                           axis=-1)                                  # (B, H, 3*KK)
    xcat = jnp.pad(xcat, ((0, 0), (0, 0), (0, Kp - K3)))
    xcat = xcat.reshape(B * H, Kp).astype(matmul_dtype)

    # ---- sub-pixel weight folding (pure parameter repacking, done once by XLA) ----
    # A 3x3 conv on a x2-nearest-upsampled image reads each original pixel through at
    # most 2 row shifts and 2 column shifts per output parity.
    R = jnp.array([[[1., 0., 0.], [0., 1., 1.], [0., 0., 0.]],
                   [[0., 0., 0.], [1., 1., 0.], [0., 0., 1.]]], jnp.float32)
    # Wc[p, s, t, ci, co] with p = 2*ry + rx (s = row shift, t = col shift)
    Wc = jnp.einsum('ask,btl,oikl->abstio', R, R, conv_w).reshape(4, 3, 3, Cin, Cout)
    w_in = jnp.arange(W + 2)[:, None]                                # padded column index
    x_out = jnp.arange(W)[None, :]                                   # output column index
    t_off = w_in - x_out                                             # (W+2, W)
    gathered = Wc[:, :, jnp.clip(t_off, 0, 2), :, :]                 # (4,3,W+2,W,Cin,Cout)
    gathered = jnp.where(((t_off >= 0) & (t_off <= 2))[None, None, :, :, None, None],
                         gathered, 0.0)
    # axes (s, w_in, ci, p, x_out, co): K index = s*KK + w_in*Cin + ci,
    #                                   lane   = p*(W*Cout) + x_out*Cout + co
    G = jnp.transpose(gathered, (1, 2, 4, 0, 3, 5)).reshape(K3, N)
    G = jnp.pad(G, ((0, Kp - K3), (0, 0))).astype(matmul_dtype)

    # ---- constants: channel-averaging matrix and image<->row selectors ----
    selt = (jnp.arange(Cout)[:, None] == (jnp.arange(N)[None, :] % Cout)
            ).astype(jnp.float32)                                    # (Cout, N) one-hot
    p_avg = (selt.T @ selt) / float(2 * H * 2 * W)                   # (N, N)
    img_of_row = jnp.arange(tb * H) // H
    seg = (jnp.arange(tb)[:, None] == img_of_row[None, :]).astype(jnp.float32)  # (tb, tb*H)
    segt = seg.T                                                     # (tb*H, tb)

    # ---- style linear hoisted out of the kernel, pre-broadcast to lane layout ----
    style = params @ style_w.T + style_b                             # (B, 2*Cout)
    gamma_l = style[:, :Cout] @ selt                                 # (B, N)
    beta_l = style[:, Cout:] @ selt                                  # (B, N)

    out_flat = pl.pallas_call(
        _up_conv_kernel,
        out_shape=jax.ShapeDtypeStruct((B * H, N), jnp.float32),
        grid=(B // tb,),
        in_specs=[
            pl.BlockSpec((tb * H, Kp), lambda i: (i, 0)),            # folded input rows
            pl.BlockSpec((Kp, N), lambda i: (0, 0)),                 # folded conv weights
            pl.BlockSpec((tb, tb * H), lambda i: (0, 0)),            # image-of-row selector
            pl.BlockSpec((tb * H, tb), lambda i: (0, 0)),            # row broadcast-back
            pl.BlockSpec((N, N), lambda i: (0, 0)),                  # channel-averaging
            pl.BlockSpec((tb, N), lambda i: (i, 0)),                 # per-lane gamma
            pl.BlockSpec((tb, N), lambda i: (i, 0)),                 # per-lane beta
        ],
        out_specs=pl.BlockSpec((tb * H, N), lambda i: (i, 0)),
        compiler_params=pltpu.CompilerParams(
            # The batch-of-image-groups axis is fully independent -> megacore shards it.
            dimension_semantics=("parallel",),
            # ~3 MB of double-buffered blocks + ~1.5 MB temporaries: under every
            # generation's scoped-VMEM budget.  Constant-index blocks are only DMA'd
            # once; at production sizes single-buffer them / move to the im2col path.
            vmem_limit_bytes=32 * 1024 * 1024,
        ),
    )(xcat, G, seg, segt, p_avg, gamma_l, beta_l)

    # ---- glue: pixel-shuffle the 4 parities back to NCHW (B, Cout, 2H, 2W) ----
    # TODO(synk): emit NHWC / fuse into the consumer to avoid this extra HBM round trip.
    o = out_flat.reshape(B, H, 2, 2, W, Cout)                        # [b, y, ry, rx, x, c]
    o = jnp.transpose(o, (0, 5, 1, 2, 4, 3))                         # [b, c, y, ry, x, rx]
    return o.reshape(B, Cout, 2 * H, 2 * W)


def _reference_forward(x_nchw, params, conv_w, conv_b, style_w, style_b):
    """Pure-JAX reference mirroring the PyTorch module, for verification."""
    x = jnp.transpose(x_nchw, (0, 2, 3, 1))
    x = jnp.repeat(jnp.repeat(x, 2, axis=1), 2, axis=2)              # nearest x2
    w_hwio = jnp.transpose(conv_w, (2, 3, 1, 0))
    y = lax.conv_general_dilated(
        x, w_hwio, window_strides=(1, 1), padding="SAME",
        dimension_numbers=("NHWC", "HWIO", "NHWC"),
        precision=lax.Precision.HIGHEST)
    y = y + conv_b[None, None, None, :]
    mean = jnp.mean(y, axis=(1, 2), keepdims=True)
    var = jnp.mean((y - mean) ** 2, axis=(1, 2), keepdims=True)
    y = (y - mean) * lax.rsqrt(var + 1e-5)
    Cout = conv_w.shape[0]
    style = params @ style_w.T + style_b
    gamma = style[:, :Cout][:, None, None, :]
    beta = style[:, Cout:][:, None, None, :]
    y = jnp.maximum(gamma * y + beta, 0.0)
    return jnp.transpose(y, (0, 3, 1, 2))


if __name__ == "__main__":
    # Small shapes consistent with the module (W*Cout = 128 -> lane-dense output).
    B, Cin, Cout, H, W, P = 2, 4, 8, 16, 16, 16

    key = jax.random.PRNGKey(0)
    k_x, k_p, k_cw, k_cb, k_sw = jax.random.split(key, 5)

    x = jax.random.normal(k_x, (B, Cin, H, W), dtype=jnp.float32)
    params = jax.random.normal(k_p, (B, P), dtype=jnp.float32)

    # Conv2d params (torch-default-like uniform init).
    fan_in = Cin * 3 * 3
    bound = 1.0 / jnp.sqrt(fan_in)
    conv_w = jax.random.uniform(k_cw, (Cout, Cin, 3, 3), jnp.float32, -bound, bound)
    conv_b = jax.random.uniform(k_cb, (Cout,), jnp.float32, -bound, bound)

    # Style linear: xavier_normal weight, bias = [ones(Cout), zeros(Cout)].
    std = jnp.sqrt(2.0 / (P + 2 * Cout))
    style_w = std * jax.random.normal(k_sw, (2 * Cout, P), dtype=jnp.float32)
    style_b = jnp.concatenate([jnp.ones((Cout,), jnp.float32),
                               jnp.zeros((Cout,), jnp.float32)])

    ref = _reference_forward(x, params, conv_w, conv_b, style_w, style_b)

    # Exact-semantics path: f32 conv operands, tight tolerance.
    out_f32 = jax.block_until_ready(
        up_conv_forward(x, params, conv_w, conv_b, style_w, style_b,
                        matmul_dtype=jnp.float32))
    assert out_f32.shape == (B, Cout, 2 * H, 2 * W)
    assert jnp.allclose(out_f32, ref, atol=5e-4, rtol=5e-4), \
        float(jnp.max(jnp.abs(out_f32 - ref)))

    # Production path (default): bf16 conv operands, f32 accumulation (looser check).
    out_bf16 = jax.block_until_ready(
        up_conv_forward(x, params, conv_w, conv_b, style_w, style_b))
    assert out_bf16.shape == (B, Cout, 2 * H, 2 * W)
    assert jnp.allclose(out_bf16, ref, atol=1e-1, rtol=5e-2), \
        float(jnp.max(jnp.abs(out_bf16 - ref)))

    print("KERNEL_OK")
</pallas_src>

<mosaic_0001>
module attributes {stable_mosaic.version = 11 : i64} {
  func.func @_up_conv_kernel(%arg0: i32, %arg1: memref<32x256xf32, #tpu.memory_space<vmem>>, %arg2: memref<256x512xf32, #tpu.memory_space<vmem>>, %arg3: memref<2x32xf32, #tpu.memory_space<vmem>>, %arg4: memref<32x2xf32, #tpu.memory_space<vmem>>, %arg5: memref<512x512xf32, #tpu.memory_space<vmem>>, %arg6: memref<2x512xf32, #tpu.memory_space<vmem>>, %arg7: memref<2x512xf32, #tpu.memory_space<vmem>>, %arg8: memref<32x512xf32, #tpu.memory_space<vmem>>) attributes {dimension_semantics = [#tpu.dimension_semantics<parallel>], iteration_bounds = array<i64: 1>, scalar_prefetch = 0 : i64, scratch_operands = 0 : i64, tpu.core_type = #tpu.core_type<tc>, window_params = [{transform_indices = @transform_0, window_bounds = array<i64: 32, 256>}, {pipeline_mode = #tpu.pipeline_mode<synchronous>, transform_indices = @transform_1, window_bounds = array<i64: 256, 512>}, {pipeline_mode = #tpu.pipeline_mode<synchronous>, transform_indices = @transform_2, window_bounds = array<i64: 2, 32>}, {pipeline_mode = #tpu.pipeline_mode<synchronous>, transform_indices = @transform_3, window_bounds = array<i64: 32, 2>}, {pipeline_mode = #tpu.pipeline_mode<synchronous>, transform_indices = @transform_4, window_bounds = array<i64: 512, 512>}, {transform_indices = @transform_5, window_bounds = array<i64: 2, 512>}, {transform_indices = @transform_6, window_bounds = array<i64: 2, 512>}, {transform_indices = @transform_7, window_bounds = array<i64: 32, 512>}]} {
    %c0 = arith.constant 0 : index
    %c0_0 = arith.constant 0 : index
    %0 = vector.load %arg1[%c0, %c0_0] : memref<32x256xf32, #tpu.memory_space<vmem>>, vector<32x256xf32>
    %c0_1 = arith.constant 0 : index
    %c0_2 = arith.constant 0 : index
    %1 = vector.load %arg2[%c0_1, %c0_2] : memref<256x512xf32, #tpu.memory_space<vmem>>, vector<256x512xf32>
    %cst = arith.constant dense<0.000000e+00> : vector<32x512xf32>
    %2 = tpu.matmul %0, %1, %cst {dimension_numbers = #tpu.dot_dimension_numbers<[1], [0], [0], [1], [0, 0, 1, 1], [], []>} : vector<32x256xf32>, vector<256x512xf32>, vector<32x512xf32> -> vector<32x512xf32>
    %c0_3 = arith.constant 0 : index
    %c0_4 = arith.constant 0 : index
    %3 = vector.load %arg3[%c0_3, %c0_4] : memref<2x32xf32, #tpu.memory_space<vmem>>, vector<2x32xf32>
    %4 = arith.mulf %2, %2 : vector<32x512xf32>
    %5 = tpu.concatenate %2, %4 in 1 : vector<32x512xf32>, vector<32x512xf32> -> vector<32x1024xf32>
    %cst_5 = arith.constant dense<0.000000e+00> : vector<2x1024xf32>
    %6 = tpu.matmul %3, %5, %cst_5 {dimension_numbers = #tpu.dot_dimension_numbers<[1], [0], [0], [1], [0, 0, 1, 1], [], []>} : vector<2x32xf32>, vector<32x1024xf32>, vector<2x1024xf32> -> vector<2x1024xf32>
    %c0_6 = arith.constant 0 : index
    %c0_7 = arith.constant 0 : index
    %7 = vector.load %arg5[%c0_6, %c0_7] : memref<512x512xf32, #tpu.memory_space<vmem>>, vector<512x512xf32>
    %8 = vector.extract_strided_slice %6 {offsets = [0, 0], sizes = [2, 512], strides = [1, 1]} : vector<2x1024xf32> to vector<2x512xf32>
    %cst_8 = arith.constant dense<0.000000e+00> : vector<2x512xf32>
    %9 = tpu.matmul %8, %7, %cst_8 {dimension_numbers = #tpu.dot_dimension_numbers<[1], [0], [0], [1], [0, 0, 1, 1], [], []>} : vector<2x512xf32>, vector<512x512xf32>, vector<2x512xf32> -> vector<2x512xf32>
    %10 = vector.extract_strided_slice %6 {offsets = [0, 512], sizes = [2, 512], strides = [1, 1]} : vector<2x1024xf32> to vector<2x512xf32>
    %cst_9 = arith.constant dense<0.000000e+00> : vector<2x512xf32>
    %11 = tpu.matmul %10, %7, %cst_9 {dimension_numbers = #tpu.dot_dimension_numbers<[1], [0], [0], [1], [0, 0, 1, 1], [], []>} : vector<2x512xf32>, vector<512x512xf32>, vector<2x512xf32> -> vector<2x512xf32>
    %12 = arith.mulf %9, %9 : vector<2x512xf32>
    %13 = arith.subf %11, %12 : vector<2x512xf32>
    %cst_10 = arith.constant 0.000000e+00 : f32
    %14 = vector.broadcast %cst_10 : f32 to vector<2x512xf32>
    %15 = arith.maximumf %13, %14 : vector<2x512xf32>
    %c0_11 = arith.constant 0 : index
    %c0_12 = arith.constant 0 : index
    %16 = vector.load %arg6[%c0_11, %c0_12] : memref<2x512xf32, #tpu.memory_space<vmem>>, vector<2x512xf32>
    %cst_13 = arith.constant 9.99999974E-6 : f32
    %17 = vector.broadcast %cst_13 : f32 to vector<2x512xf32>
    %18 = arith.addf %15, %17 : vector<2x512xf32>
    %19 = math.rsqrt %18 : vector<2x512xf32>
    %20 = arith.mulf %16, %19 : vector<2x512xf32>
    %c0_14 = arith.constant 0 : index
    %c0_15 = arith.constant 0 : index
    %21 = vector.load %arg7[%c0_14, %c0_15] : memref<2x512xf32, #tpu.memory_space<vmem>>, vector<2x512xf32>
    %22 = arith.mulf %9, %20 : vector<2x512xf32>
    %23 = arith.subf %21, %22 : vector<2x512xf32>
    %c0_16 = arith.constant 0 : index
    %c0_17 = arith.constant 0 : index
    %24 = vector.load %arg4[%c0_16, %c0_17] : memref<32x2xf32, #tpu.memory_space<vmem>>, vector<32x2xf32>
    %25 = tpu.concatenate %20, %23 in 1 : vector<2x512xf32>, vector<2x512xf32> -> vector<2x1024xf32>
    %cst_18 = arith.constant dense<0.000000e+00> : vector<32x1024xf32>
    %26 = tpu.matmul %24, %25, %cst_18 {dimension_numbers = #tpu.dot_dimension_numbers<[1], [0], [0], [1], [0, 0, 1, 1], [], []>} : vector<32x2xf32>, vector<2x1024xf32>, vector<32x1024xf32> -> vector<32x1024xf32>
    %27 = vector.extract_strided_slice %26 {offsets = [0, 0], sizes = [32, 512], strides = [1, 1]} : vector<32x1024xf32> to vector<32x512xf32>
    %28 = arith.mulf %2, %27 : vector<32x512xf32>
    %29 = vector.extract_strided_slice %26 {offsets = [0, 512], sizes = [32, 512], strides = [1, 1]} : vector<32x1024xf32> to vector<32x512xf32>
    %30 = arith.addf %28, %29 : vector<32x512xf32>
    %cst_19 = arith.constant 0.000000e+00 : f32
    %31 = vector.broadcast %cst_19 : f32 to vector<32x512xf32>
    %32 = arith.maximumf %30, %31 : vector<32x512xf32>
    %c0_20 = arith.constant 0 : index
    %c0_21 = arith.constant 0 : index
    %33 = vector.load %arg8[%c0_20, %c0_21] : memref<32x512xf32, #tpu.memory_space<vmem>>, vector<32x512xf32>
    tpu.vector_store %arg8[%c0_20, %c0_21], %32 {strides = array<i32>} : memref<32x512xf32, #tpu.memory_space<vmem>>, vector<32x512xf32>,
    return
  }
  func.func @transform_0(%arg0: i32) -> (i32, i32) {
    %c0_i32 = arith.constant 0 : i32
    %c0_i32_0 = arith.constant 0 : i32
    return %arg0, %c0_i32 : i32, i32
  }
  func.func @transform_1(%arg0: i32) -> (i32, i32) {
    %c0_i32 = arith.constant 0 : i32
    %c0_i32_0 = arith.constant 0 : i32
    %c0_i32_1 = arith.constant 0 : i32
    return %c0_i32, %c0_i32_0 : i32, i32
  }
  func.func @transform_2(%arg0: i32) -> (i32, i32) {
    %c0_i32 = arith.constant 0 : i32
    %c0_i32_0 = arith.constant 0 : i32
    %c0_i32_1 = arith.constant 0 : i32
    return %c0_i32, %c0_i32_0 : i32, i32
  }
  func.func @transform_3(%arg0: i32) -> (i32, i32) {
    %c0_i32 = arith.constant 0 : i32
    %c0_i32_0 = arith.constant 0 : i32
    %c0_i32_1 = arith.constant 0 : i32
    return %c0_i32, %c0_i32_0 : i32, i32
  }
  func.func @transform_4(%arg0: i32) -> (i32, i32) {
    %c0_i32 = arith.constant 0 : i32
    %c0_i32_0 = arith.constant 0 : i32
    %c0_i32_1 = arith.constant 0 : i32
    return %c0_i32, %c0_i32_0 : i32, i32
  }
  func.func @transform_5(%arg0: i32) -> (i32, i32) {
    %c0_i32 = arith.constant 0 : i32
    %c0_i32_0 = arith.constant 0 : i32
    return %arg0, %c0_i32 : i32, i32
  }
  func.func @transform_6(%arg0: i32) -> (i32, i32) {
    %c0_i32 = arith.constant 0 : i32
    %c0_i32_0 = arith.constant 0 : i32
    return %arg0, %c0_i32 : i32, i32
  }
  func.func @transform_7(%arg0: i32) -> (i32, i32) {
    %c0_i32 = arith.constant 0 : i32
    %c0_i32_0 = arith.constant 0 : i32
    return %arg0, %c0_i32 : i32, i32
  }
}

</mosaic_0001>

<bundles_post_ra>
// kernel: tpu_custom_call.1
= control target key start
LH: loop header
LB: loop body
LE: loop exit
PB: predicated region body
PF: predicated region fallthrough
CT: control target
= control target key end

     0   :  { %12 = vsyncpa [#allocation3], 0  ;;  %s3516_s0 = inlined_call_operand.hbm [shape: f32[32,256], index: 0, kind: input, shape index: {}]   ;;  %s3517_s1 = inlined_call_operand.hbm [shape: f32[256,512], index: 1, kind: input, shape index: {}]   ;;  %s3518_s2 = inlined_call_operand.vmem [shape: f32[2,32], index: 2, kind: input, shape index: {}]   ;;  %s3519_s3 = inlined_call_operand.vmem [shape: f32[32,2], index: 3, kind: input, shape index: {}]   ;;  %s3520_s4 = inlined_call_operand.hbm [shape: f32[512,512], index: 4, kind: input, shape index: {}]   ;;  %s3521_s5 = inlined_call_operand.vmem [shape: f32[2,512], index: 5, kind: input, shape index: {}]   ;;  %s3522_s6 = inlined_call_operand.vmem [shape: f32[2,512], index: 6, kind: input, shape index: {}]   ;;  %s3523_s7 = inlined_call_operand.hbm [shape: f32[32,512], index: 7, kind: output, shape index: {}]  }
   0x1   :  { %13 = vsyncpa [#allocation6], 0  ;;  %s32_s26 = sshll.u32 %s3517_s1, 4  ;;  %s33_s26 = int_to_ptr.hbm [resolvable:$true] %s32_s26 }
   0x2   :  { %14 = vsyncpa [#allocation4], 0  ;;  %s2154_s27 = smov [#allocation5]   ;;  %s19_s8 = sshll.u32 %s3516_s0, 4  ;;  %s20_s8 = int_to_ptr.hbm [resolvable:$true] %s19_s8 }
   0x3   :  { %s34_s28 = sshll.u32 %s2154_s27, 4  ;;  %s2155_s9 = smov 512   ;;  %s35_s28 = int_to_ptr.vmem [resolvable:$true] %s34_s28 }
   0x4   :  { %s2156_s10 = smov 32   ;;  %s2157_s11 = smov [#allocation2]  }
   0x5   :  { %40 = dma.hbm_to_vmem [thread:$0]  %s33_s26, 16384, %s35_s28, [#allocation6], %s2155_s9, %s2155_s9, %s2156_s10  }
   0x6   :  { %s21_s12 = sshll.u32 %s2157_s11, 4  ;;  %s2158_s1 = smov 256   ;;  %s22_s12 = int_to_ptr.vmem [resolvable:$true] %s21_s12 }
   0x7   :  { %s2159_s13 = smov 16   ;;  %s49_s16 = sshll.u32 %s3520_s4, 4  ;;  %s50_s16 = int_to_ptr.hbm [resolvable:$true] %s49_s16 }
   0x8   :  { %27 = dma.hbm_to_vmem [thread:$0]  %s20_s8, 1024, %s22_s12, [#allocation3], %s2158_s1, %s2158_s1, %s2159_s13  }
   0x9   :  { %s2160_s17 = smov [#allocation7]  }
   0xa   :  { %s51_s0 = sshll.u32 %s2160_s17, 4  ;;  %s52_s0 = int_to_ptr.vmem [resolvable:$true] %s51_s0 }
   0xb   :  { %57 = dma.hbm_to_vmem [thread:$0]  %s50_s16, 32768, %s52_s0, [#allocation6], %s2155_s9, %s2155_s9, %s2156_s10  }
   0xc   :  { %2148 = dma.done.wait [#allocation3], 1024  }
   0xd   :  { %2149 = vsyncadd [#allocation3], 4294966272 }
   0xe   :  { %2150 = dma.done.wait [#allocation6], 49152  }
   0xf   :  { %2151 = vsyncadd [#allocation6], 4294918144  ;;  %v142_v0 = vld [vmem:[#allocation5 + $0x1e0] sm:$0xff]  ;;  %v143_v2 = vld [vmem:[#allocation5 + $0x1e8] sm:$0xff]  ;;  %vm459_vm0 = vcmask 261120   ;;  %vm1583_vm12 = vcmask 1041408  }
  0x10   :  { %v206_v1 = vld [vmem:[#allocation5 + $0x3e0] sm:$0xff]  ;;  %210 = vmatpush.msra.mxu0 %v142_v0  ;;  %v207_v3 = vld [vmem:[#allocation5 + $0x3e8] sm:$0xff]  ;;  %268 = vmatpush.msra.mxu2 %v143_v2  ;;  %v144_v2 = vld [vmem:[#allocation5 + $0x1f0] sm:$0xff]  ;;  %vm1585_vm13 = vcmask 1045508   ;;  %vm1587_vm15 = vcmask 1043456   ;;  %s1964_s8 = sshll.u32 %s3523_s7, 4  ;;  %s1965_s8 = int_to_ptr.hbm [resolvable:$true] %s1964_s8 }
  0x11   :  { %239 = vmatpush.msra.mxu1 %v206_v1  ;;  %v138_v4 = vld [vmem:[#allocation5 + $0x1c0] sm:$0xff]  ;;  %297 = vmatpush.msra.mxu3 %v207_v3  ;;  %v139_v6 = vld [vmem:[#allocation5 + $0x1c8] sm:$0xff]  ;;  %v208_v3 = vld [vmem:[#allocation5 + $0x3f0] sm:$0xff] }
  0x12   :  { %v202_v5 = vld [vmem:[#allocation5 + $0x3c0] sm:$0xff]  ;;  %v203_v7 = vld [vmem:[#allocation5 + $0x3c8] sm:$0xff]  ;;  %211 = vmatpush.msra.mxu0 %v138_v4  ;;  %269 = vmatpush.msra.mxu2 %v139_v6  ;;  %v145_v4 = vld [vmem:[#allocation5 + $0x1f8] sm:$0xff] }
  0x13   :  { %v134_v8 = vld [vmem:[#allocation5 + $0x1a0] sm:$0xff]  ;;  %240 = vmatpush.msra.mxu1 %v202_v5  ;;  %v135_v10 = vld [vmem:[#allocation5 + $0x1a8] sm:$0xff]  ;;  %298 = vmatpush.msra.mxu3 %v203_v7  ;;  %v209_v5 = vld [vmem:[#allocation5 + $0x3f8] sm:$0xff] }
  0x14   :  { %v198_v9 = vld [vmem:[#allocation5 + $0x3a0] sm:$0xff]  ;;  %v199_v11 = vld [vmem:[#allocation5 + $0x3a8] sm:$0xff]  ;;  %212 = vmatpush.msra.mxu0 %v134_v8  ;;  %270 = vmatpush.msra.mxu2 %v135_v10  ;;  %v140_v6 = vld [vmem:[#allocation5 + $0x1d0] sm:$0xff] }
  0x15   :  { %v130_v12 = vld [vmem:[#allocation5 + $0x180] sm:$0xff]  ;;  %241 = vmatpush.msra.mxu1 %v198_v9  ;;  %v131_v14 = vld [vmem:[#allocation5 + $0x188] sm:$0xff]  ;;  %299 = vmatpush.msra.mxu3 %v199_v11  ;;  %v204_v7 = vld [vmem:[#allocation5 + $0x3d0] sm:$0xff] }
  0x16   :  { %v194_v13 = vld [vmem:[#allocation5 + $0x380] sm:$0xff]  ;;  %v195_v15 = vld [vmem:[#allocation5 + $0x388] sm:$0xff]  ;;  %213 = vmatpush.msra.mxu0 %v130_v12  ;;  %271 = vmatpush.msra.mxu2 %v131_v14  ;;  %v141_v8 = vld [vmem:[#allocation5 + $0x1d8] sm:$0xff] }
  0x17   :  { %v126_v16 = vld [vmem:[#allocation5 + $0x160] sm:$0xff]  ;;  %242 = vmatpush.msra.mxu1 %v194_v13  ;;  %v127_v18 = vld [vmem:[#allocation5 + $0x168] sm:$0xff]  ;;  %300 = vmatpush.msra.mxu3 %v195_v15  ;;  %v205_v9 = vld [vmem:[#allocation5 + $0x3d8] sm:$0xff] }
  0x18   :  { %v190_v17 = vld [vmem:[#allocation5 + $0x360] sm:$0xff]  ;;  %v191_v19 = vld [vmem:[#allocation5 + $0x368] sm:$0xff]  ;;  %214 = vmatpush.msra.mxu0 %v126_v16  ;;  %272 = vmatpush.msra.mxu2 %v127_v18  ;;  %v136_v10 = vld [vmem:[#allocation5 + $0x1b0] sm:$0xff] }
  0x19   :  { %v122_v20 = vld [vmem:[#allocation5 + $0x140] sm:$0xff]  ;;  %243 = vmatpush.msra.mxu1 %v190_v17  ;;  %v123_v22 = vld [vmem:[#allocation5 + $0x148] sm:$0xff]  ;;  %301 = vmatpush.msra.mxu3 %v191_v19  ;;  %v200_v11 = vld [vmem:[#allocation5 + $0x3b0] sm:$0xff] }
  0x1a   :  { %v186_v21 = vld [vmem:[#allocation5 + $0x340] sm:$0xff]  ;;  %v187_v23 = vld [vmem:[#allocation5 + $0x348] sm:$0xff]  ;;  %215 = vmatpush.msra.mxu0 %v122_v20  ;;  %273 = vmatpush.msra.mxu2 %v123_v22  ;;  %v137_v12 = vld [vmem:[#allocation5 + $0x1b8] sm:$0xff] }
  0x1b   :  { %v118_v24 = vld [vmem:[#allocation5 + $0x120] sm:$0xff]  ;;  %244 = vmatpush.msra.mxu1 %v186_v21  ;;  %v119_v26 = vld [vmem:[#allocation5 + $0x128] sm:$0xff]  ;;  %302 = vmatpush.msra.mxu3 %v187_v23  ;;  %v201_v13 = vld [vmem:[#allocation5 + $0x3b8] sm:$0xff] }
  0x1c   :  { %v182_v25 = vld [vmem:[#allocation5 + $0x320] sm:$0xff]  ;;  %v183_v27 = vld [vmem:[#allocation5 + $0x328] sm:$0xff]  ;;  %216 = vmatpush.msra.mxu0 %v118_v24  ;;  %274 = vmatpush.msra.mxu2 %v119_v26  ;;  %v132_v14 = vld [vmem:[#allocation5 + $0x190] sm:$0xff] }
  0x1d   :  { %v114_v28 = vld [vmem:[#allocation5 + $0x100] sm:$0xff]  ;;  %245 = vmatpush.msra.mxu1 %v182_v25  ;;  %v115_v30 = vld [vmem:[#allocation5 + $0x108] sm:$0xff]  ;;  %303 = vmatpush.msra.mxu3 %v183_v27  ;;  %v196_v15 = vld [vmem:[#allocation5 + $0x390] sm:$0xff] }
  0x1e   :  { %v178_v29 = vld [vmem:[#allocation5 + $0x300] sm:$0xff]  ;;  %v179_v31 = vld [vmem:[#allocation5 + $0x308] sm:$0xff]  ;;  %217 = vmatpush.msra.mxu0 %v114_v28  ;;  %275 = vmatpush.msra.mxu2 %v115_v30  ;;  %v133_v16 = vld [vmem:[#allocation5 + $0x198] sm:$0xff] }
  0x1f   :  { %v110_v32 = vld [vmem:[#allocation5 + $0xe0] sm:$0xff]  ;;  %246 = vmatpush.msra.mxu1 %v178_v29  ;;  %v111_v34 = vld [vmem:[#allocation5 + $0xe8] sm:$0xff]  ;;  %304 = vmatpush.msra.mxu3 %v179_v31  ;;  %v197_v17 = vld [vmem:[#allocation5 + $0x398] sm:$0xff] }
  0x20   :  { %v174_v33 = vld [vmem:[#allocation5 + $0x2e0] sm:$0xff]  ;;  %v175_v35 = vld [vmem:[#allocation5 + $0x2e8] sm:$0xff]  ;;  %218 = vmatpush.msra.mxu0 %v110_v32  ;;  %276 = vmatpush.msra.mxu2 %v111_v34  ;;  %v2225_v18 = vld [vmem:[#allocation2 + $0x10] sm:$0xff] }
  0x21   :  { %v106_v36 = vld [vmem:[#allocation5 + $0xc0] sm:$0xff]  ;;  %247 = vmatpush.msra.mxu1 %v174_v33  ;;  %v107_v38 = vld [vmem:[#allocation5 + $0xc8] sm:$0xff]  ;;  %305 = vmatpush.msra.mxu3 %v175_v35  ;;  %v2227_v19 = vld [vmem:[#allocation2 + $0x18] sm:$0xff] }
  0x22   :  { %v170_v37 = vld [vmem:[#allocation5 + $0x2c0] sm:$0xff]  ;;  %v171_v39 = vld [vmem:[#allocation5 + $0x2c8] sm:$0xff]  ;;  %219 = vmatpush.msra.mxu0 %v106_v36  ;;  %277 = vmatpush.msra.mxu2 %v107_v38  ;;  %v128_v20 = vld [vmem:[#allocation5 + $0x170] sm:$0xff] }
  0x23   :  { %v102_v40 = vld [vmem:[#allocation5 + $0xa0] sm:$0xff]  ;;  %248 = vmatpush.msra.mxu1 %v170_v37  ;;  %v103_v42 = vld [vmem:[#allocation5 + $0xa8] sm:$0xff]  ;;  %306 = vmatpush.msra.mxu3 %v171_v39  ;;  %v192_v21 = vld [vmem:[#allocation5 + $0x370] sm:$0xff] }
  0x24   :  { %v166_v41 = vld [vmem:[#allocation5 + $0x2a0] sm:$0xff]  ;;  %v167_v43 = vld [vmem:[#allocation5 + $0x2a8] sm:$0xff]  ;;  %220 = vmatpush.msra.mxu0 %v102_v40  ;;  %278 = vmatpush.msra.mxu2 %v103_v42  ;;  %v129_v22 = vld [vmem:[#allocation5 + $0x178] sm:$0xff] }
  0x25   :  { %v98_v44 = vld [vmem:[#allocation5 + $0x80] sm:$0xff]  ;;  %249 = vmatpush.msra.mxu1 %v166_v41  ;;  %v99_v46 = vld [vmem:[#allocation5 + $0x88] sm:$0xff]  ;;  %307 = vmatpush.msra.mxu3 %v167_v43  ;;  %v193_v23 = vld [vmem:[#allocation5 + $0x378] sm:$0xff] }
  0x26   :  { %v162_v45 = vld [vmem:[#allocation5 + $0x280] sm:$0xff]  ;;  %v163_v47 = vld [vmem:[#allocation5 + $0x288] sm:$0xff]  ;;  %221 = vmatpush.msra.mxu0 %v98_v44  ;;  %279 = vmatpush.msra.mxu2 %v99_v46  ;;  %v124_v24 = vld [vmem:[#allocation5 + $0x150] sm:$0xff] }
  0x27   :  { %v94_v48 = vld [vmem:[#allocation5 + $0x60] sm:$0xff]  ;;  %250 = vmatpush.msra.mxu1 %v162_v45  ;;  %v95_v50 = vld [vmem:[#allocation5 + $0x68] sm:$0xff]  ;;  %308 = vmatpush.msra.mxu3 %v163_v47  ;;  %v188_v25 = vld [vmem:[#allocation5 + $0x350] sm:$0xff] }
  0x28   :  { %v158_v49 = vld [vmem:[#allocation5 + $0x260] sm:$0xff]  ;;  %v159_v51 = vld [vmem:[#allocation5 + $0x268] sm:$0xff]  ;;  %222 = vmatpush.msra.mxu0 %v94_v48  ;;  %280 = vmatpush.msra.mxu2 %v95_v50  ;;  %v125_v26 = vld [vmem:[#allocation5 + $0x158] sm:$0xff] }
  0x29   :  { %v90_v52 = vld [vmem:[#allocation5 + $0x40] sm:$0xff]  ;;  %251 = vmatpush.msra.mxu1 %v158_v49  ;;  %v91_v54 = vld [vmem:[#allocation5 + $0x48] sm:$0xff]  ;;  %309 = vmatpush.msra.mxu3 %v159_v51  ;;  %v189_v27 = vld [vmem:[#allocation5 + $0x358] sm:$0xff] }
  0x2a   :  { %v154_v53 = vld [vmem:[#allocation5 + $0x240] sm:$0xff]  ;;  %v155_v55 = vld [vmem:[#allocation5 + $0x248] sm:$0xff]  ;;  %223 = vmatpush.msra.mxu0 %v90_v52  ;;  %281 = vmatpush.msra.mxu2 %v91_v54  ;;  %v120_v28 = vld [vmem:[#allocation5 + $0x130] sm:$0xff] }
  0x2b   :  { %v86_v56 = vld [vmem:[#allocation5 + $0x20] sm:$0xff]  ;;  %252 = vmatpush.msra.mxu1 %v154_v53  ;;  %v87_v58 = vld [vmem:[#allocation5 + $0x28] sm:$0xff]  ;;  %310 = vmatpush.msra.mxu3 %v155_v55  ;;  %v184_v29 = vld [vmem:[#allocation5 + $0x330] sm:$0xff] }
  0x2c   :  { %v150_v57 = vld [vmem:[#allocation5 + $0x220] sm:$0xff]  ;;  %v151_v59 = vld [vmem:[#allocation5 + $0x228] sm:$0xff]  ;;  %224 = vmatpush.msra.mxu0 %v86_v56  ;;  %282 = vmatpush.msra.mxu2 %v87_v58  ;;  %v121_v30 = vld [vmem:[#allocation5 + $0x138] sm:$0xff] }
  0x2d   :  { %v82_v60 = vld [vmem:[#allocation5] sm:$0xff]  ;;  %253 = vmatpush.msra.mxu1 %v150_v57  ;;  %v83_v62 = vld [vmem:[#allocation5 + $0x8] sm:$0xff]  ;;  %311 = vmatpush.msra.mxu3 %v151_v59  ;;  %v185_v31 = vld [vmem:[#allocation5 + $0x338] sm:$0xff] }
  0x2e   :  { %v146_v61 = vld [vmem:[#allocation5 + $0x200] sm:$0xff]  ;;  %v147_v63 = vld [vmem:[#allocation5 + $0x208] sm:$0xff]  ;;  %225 = vmatpush.msra.mxu0 %v82_v60  ;;  %283 = vmatpush.msra.mxu2 %v83_v62  ;;  %v116_v32 = vld [vmem:[#allocation5 + $0x110] sm:$0xff] }
  0x2f   :  { %v2217_v0 = vld [vmem:[#allocation2] sm:$0xff]  ;;  %v2219_v1 = vld [vmem:[#allocation2 + $0x8] sm:$0xff]  ;;  %254 = vmatpush.msra.mxu1 %v146_v61  ;;  %312 = vmatpush.msra.mxu3 %v147_v63  ;;  %v180_v33 = vld [vmem:[#allocation5 + $0x310] sm:$0xff] }
  0x30   :  { %226 = vmatmul.f32.vlgmr.msra.gmra.mxu0 %v2217_v0  ;;  %255 = vmatmul.f32.vlgmr.msra.gmra.mxu1 %v2219_v1  ;;  %v117_v34 = vld [vmem:[#allocation5 + $0x118] sm:$0xff]  ;;  %v2233_v36 = vld [vmem:[#allocation2 + $0x20] sm:$0xff]  ;;  %v2235_v37 = vld [vmem:[#allocation2 + $0x28] sm:$0xff] }
  0x31   :  { %284 = vmatmul.f32.vlgmr.msra.gmra.mxu2 %v2217_v0  ;;  %313 = vmatmul.f32.vlgmr.msra.gmra.mxu3 %v2219_v1  ;;  %v181_v35 = vld [vmem:[#allocation5 + $0x318] sm:$0xff]  ;;  %v112_v38 = vld [vmem:[#allocation5 + $0xf0] sm:$0xff] }
  0x32   :  { %326 = vmatpush.msrb.mxu0 %v144_v2  ;;  %355 = vmatpush.msrb.mxu1 %v208_v3  ;;  %v176_v39 = vld [vmem:[#allocation5 + $0x2f0] sm:$0xff]  ;;  %v113_v40 = vld [vmem:[#allocation5 + $0xf8] sm:$0xff] }
  0x33   :  { %384 = vmatpush.msrb.mxu2 %v145_v4  ;;  %413 = vmatpush.msrb.mxu3 %v209_v5  ;;  %v177_v41 = vld [vmem:[#allocation5 + $0x2f8] sm:$0xff]  ;;  %v108_v42 = vld [vmem:[#allocation5 + $0xd0] sm:$0xff] }
  0x34   :  { %327 = vmatpush.msrb.mxu0 %v140_v6  ;;  %356 = vmatpush.msrb.mxu1 %v204_v7  ;;  %v172_v43 = vld [vmem:[#allocation5 + $0x2d0] sm:$0xff]  ;;  %v109_v44 = vld [vmem:[#allocation5 + $0xd8] sm:$0xff] }
  0x35   :  { %385 = vmatpush.msrb.mxu2 %v141_v8  ;;  %414 = vmatpush.msrb.mxu3 %v205_v9  ;;  %v173_v45 = vld [vmem:[#allocation5 + $0x2d8] sm:$0xff]  ;;  %v104_v46 = vld [vmem:[#allocation5 + $0xb0] sm:$0xff] }
  0x36   :  { %328 = vmatpush.msrb.mxu0 %v136_v10  ;;  %357 = vmatpush.msrb.mxu1 %v200_v11  ;;  %v168_v47 = vld [vmem:[#allocation5 + $0x2b0] sm:$0xff]  ;;  %v105_v48 = vld [vmem:[#allocation5 + $0xb8] sm:$0xff] }
  0x37   :  { %386 = vmatpush.msrb.mxu2 %v137_v12  ;;  %415 = vmatpush.msrb.mxu3 %v201_v13  ;;  %v169_v49 = vld [vmem:[#allocation5 + $0x2b8] sm:$0xff]  ;;  %v100_v50 = vld [vmem:[#allocation5 + $0x90] sm:$0xff] }
  0x38   :  { %329 = vmatpush.msrb.mxu0 %v132_v14  ;;  %358 = vmatpush.msrb.mxu1 %v196_v15  ;;  %v164_v51 = vld [vmem:[#allocation5 + $0x290] sm:$0xff]  ;;  %v101_v52 = vld [vmem:[#allocation5 + $0x98] sm:$0xff] }
  0x39   :  { %387 = vmatpush.msrb.mxu2 %v133_v16  ;;  %416 = vmatpush.msrb.mxu3 %v197_v17  ;;  %v165_v53 = vld [vmem:[#allocation5 + $0x298] sm:$0xff]  ;;  %v80_v54 = vld [vmem:[#allocation2 + $0x30] sm:$0xff] }
  0x3a   :  { %229 = vmatmul.f32.gmra.mxu0 %v2225_v18  ;;  %258 = vmatmul.f32.gmra.mxu1 %v2227_v19  ;;  %v81_v55 = vld [vmem:[#allocation2 + $0x38] sm:$0xff]  ;;  %v96_v56 = vld [vmem:[#allocation5 + $0x70] sm:$0xff] }
  0x3b   :  { %287 = vmatmul.f32.gmra.mxu2 %v2225_v18  ;;  %316 = vmatmul.f32.gmra.mxu3 %v2227_v19  ;;  %v160_v57 = vld [vmem:[#allocation5 + $0x270] sm:$0xff]  ;;  %v97_v58 = vld [vmem:[#allocation5 + $0x78] sm:$0xff] }
  0x3c   :  { %330 = vmatpush.msrb.mxu0 %v128_v20  ;;  %359 = vmatpush.msrb.mxu1 %v192_v21  ;;  %v161_v59 = vld [vmem:[#allocation5 + $0x278] sm:$0xff]  ;;  %v92_v60 = vld [vmem:[#allocation5 + $0x50] sm:$0xff] }
  0x3d   :  { %388 = vmatpush.msrb.mxu2 %v129_v22  ;;  %417 = vmatpush.msrb.mxu3 %v193_v23  ;;  %v156_v61 = vld [vmem:[#allocation5 + $0x250] sm:$0xff]  ;;  %v93_v62 = vld [vmem:[#allocation5 + $0x58] sm:$0xff] }
  0x3e   :  { %331 = vmatpush.msrb.mxu0 %v124_v24  ;;  %360 = vmatpush.msrb.mxu1 %v188_v25  ;;  %v157_v63 = vld [vmem:[#allocation5 + $0x258] sm:$0xff]  ;;  %v88_v2 = vld [vmem:[#allocation5 + $0x30] sm:$0xff] }
  0x3f   :  { %389 = vmatpush.msrb.mxu2 %v125_v26  ;;  %418 = vmatpush.msrb.mxu3 %v189_v27  ;;  %v152_v3 = vld [vmem:[#allocation5 + $0x230] sm:$0xff]  ;;  %v89_v4 = vld [vmem:[#allocation5 + $0x38] sm:$0xff] }
  0x40   :  { %332 = vmatpush.msrb.mxu0 %v120_v28  ;;  %361 = vmatpush.msrb.mxu1 %v184_v29  ;;  %v153_v5 = vld [vmem:[#allocation5 + $0x238] sm:$0xff]  ;;  %v84_v6 = vld [vmem:[#allocation5 + $0x10] sm:$0xff] }
  0x41   :  { %390 = vmatpush.msrb.mxu2 %v121_v30  ;;  %419 = vmatpush.msrb.mxu3 %v185_v31  ;;  %v148_v7 = vld [vmem:[#allocation5 + $0x210] sm:$0xff]  ;;  %v85_v8 = vld [vmem:[#allocation5 + $0x18] sm:$0xff] }
  0x42   :  { %333 = vmatpush.msrb.mxu0 %v116_v32  ;;  %362 = vmatpush.msrb.mxu1 %v180_v33  ;;  %v149_v9 = vld [vmem:[#allocation5 + $0x218] sm:$0xff] }
  0x43   :  { %391 = vmatpush.msrb.mxu2 %v117_v34  ;;  %420 = vmatpush.msrb.mxu3 %v181_v35  ;;  %v2269_v29 = vld [vmem:[%s3518_s2] sm:$0x3] }
  0x44   :  { %232 = vmatmul.f32.gmra.mxu0 %v2233_v36  ;;  %261 = vmatmul.f32.gmra.mxu1 %v2235_v37 }
  0x45   :  { %290 = vmatmul.f32.gmra.mxu2 %v2233_v36  ;;  %319 = vmatmul.f32.gmra.mxu3 %v2235_v37 }
  0x46   :  { %334 = vmatpush.msrb.mxu0 %v112_v38  ;;  %363 = vmatpush.msrb.mxu1 %v176_v39 }
  0x47   :  { %392 = vmatpush.msrb.mxu2 %v113_v40  ;;  %421 = vmatpush.msrb.mxu3 %v177_v41 }
  0x48   :  { %335 = vmatpush.msrb.mxu0 %v108_v42  ;;  %364 = vmatpush.msrb.mxu1 %v172_v43 }
  0x49   :  { %393 = vmatpush.msrb.mxu2 %v109_v44  ;;  %422 = vmatpush.msrb.mxu3 %v173_v45 }
  0x4a   :  { %336 = vmatpush.msrb.mxu0 %v104_v46  ;;  %365 = vmatpush.msrb.mxu1 %v168_v47 }
  0x4b   :  { %394 = vmatpush.msrb.mxu2 %v105_v48  ;;  %423 = vmatpush.msrb.mxu3 %v169_v49 }
  0x4c   :  { %337 = vmatpush.msrb.mxu0 %v100_v50  ;;  %366 = vmatpush.msrb.mxu1 %v164_v51  ;;  %v2318_v51 = vld [vmem:[#allocation7 + $0x1e0] sm:$0xff] }
  0x4d   :  { %395 = vmatpush.msrb.mxu2 %v101_v52  ;;  %424 = vmatpush.msrb.mxu3 %v165_v53  ;;  %v2320_v52 = vld [vmem:[#allocation7 + $0x1c0] sm:$0xff] }
  0x4e   :  { %235 = vmatmul.f32.gmra.mxu0 %v80_v54  ;;  %264 = vmatmul.f32.gmra.mxu1 %v81_v55  ;;  %v2323_v53 = vld [vmem:[#allocation7 + $0x3e0] sm:$0xff] }
  0x4f   :  { %293 = vmatmul.f32.gmra.mxu2 %v80_v54  ;;  %322 = vmatmul.f32.gmra.mxu3 %v81_v55 }
  0x50   :  { %338 = vmatpush.msrb.mxu0 %v96_v56  ;;  %367 = vmatpush.msrb.mxu1 %v160_v57  ;;  %v2331_v56 = vld [vmem:[#allocation7 + $0x3a0] sm:$0xff] }
  0x51   :  { %396 = vmatpush.msrb.mxu2 %v97_v58  ;;  %425 = vmatpush.msrb.mxu3 %v161_v59  ;;  %v2333_v57 = vld [vmem:[#allocation7 + $0x180] sm:$0xff] }
  0x52   :  { %339 = vmatpush.msrb.mxu0 %v92_v60  ;;  %368 = vmatpush.msrb.mxu1 %v156_v61  ;;  %v735_v58 = vld [vmem:[#allocation7 + $0x380] sm:$0xff] }
  0x53   :  { %397 = vmatpush.msrb.mxu2 %v93_v62  ;;  %426 = vmatpush.msrb.mxu3 %v157_v63  ;;  %v2337_v59 = vld [vmem:[#allocation7 + $0x160] sm:$0xff] }
  0x54   :  { %340 = vmatpush.msrb.mxu0 %v88_v2  ;;  %369 = vmatpush.msrb.mxu1 %v152_v3  ;;  %v731_v62 = vld [vmem:[#allocation7 + $0x360] sm:$0xff] }
  0x55   :  { %398 = vmatpush.msrb.mxu2 %v89_v4  ;;  %427 = vmatpush.msrb.mxu3 %v153_v5  ;;  %v2341_v3 = vld [vmem:[#allocation7 + $0x140] sm:$0xff] }
  0x56   :  { %341 = vmatpush.msrb.mxu0 %v84_v6  ;;  %370 = vmatpush.msrb.mxu1 %v148_v7  ;;  %v727_v5 = vld [vmem:[#allocation7 + $0x340] sm:$0xff] }
  0x57   :  { %399 = vmatpush.msrb.mxu2 %v85_v8  ;;  %428 = vmatpush.msrb.mxu3 %v149_v9  ;;  %v2346_v6 = vld [vmem:[#allocation7 + $0x120] sm:$0xff] }
  0x58   :  { %342 = vmatmul.f32.vlgmr.msrb.gmra.mxu0 %v2217_v0  ;;  %371 = vmatmul.f32.vlgmr.msrb.gmra.mxu1 %v2219_v1  ;;  %v723_v8 = vld [vmem:[#allocation7 + $0x320] sm:$0xff] }
  0x59   :  { %400 = vmatmul.f32.vlgmr.msrb.gmra.mxu2 %v2217_v0  ;;  %429 = vmatmul.f32.vlgmr.msrb.gmra.mxu3 %v2219_v1  ;;  %v2352_v9 = vld [vmem:[#allocation7 + $0x100] sm:$0xff] }
  0x60   :  { %345 = vmatmul.f32.gmra.mxu0 %v2225_v18  ;;  %374 = vmatmul.f32.gmra.mxu1 %v2227_v19 }
  0x61   :  { %403 = vmatmul.f32.gmra.mxu2 %v2225_v18  ;;  %432 = vmatmul.f32.gmra.mxu3 %v2227_v19 }
  0x68   :  { %348 = vmatmul.f32.gmra.mxu0 %v2233_v36  ;;  %377 = vmatmul.f32.gmra.mxu1 %v2235_v37 }
  0x69   :  { %406 = vmatmul.f32.gmra.mxu2 %v2233_v36  ;;  %435 = vmatmul.f32.gmra.mxu3 %v2235_v37 }
  0x70   :  { %351 = vmatmul.f32.gmra.mxu0 %v80_v54  ;;  %380 = vmatmul.f32.gmra.mxu1 %v81_v55 }
  0x71   :  { %409 = vmatmul.f32.gmra.mxu2 %v80_v54  ;;  %438 = vmatmul.f32.gmra.mxu3 %v81_v55  ;;  %v2325_v54 = vld [vmem:[#allocation7 + $0x1a0] sm:$0xff] }
  0x72   :  { %v2328_v55 = vld [vmem:[#allocation7 + $0x3c0] sm:$0xff] }
  0xad   :  { %v227_v0 = vpop.f32.mrf.mxu0  ;;  %v256_v1 = vpop.f32.mrf.mxu1 }
  0xae   :  { %v2261_v25 = vadd.f32 %v256_v1, %v227_v0  ;;  %v719_v1 = vld [vmem:[#allocation7 + $0x300] sm:$0xff] }
  0xb0   :  { %3700 = vst [vmem:[#allocation15_spill] sm:$0xff] %v2261_v25  ;;  %v443_v38 = vmul.f32 %v2261_v25, %v2261_v25 }
  0xb4   :  { %v285_v10 = vpop.f32.mrf.mxu2  ;;  %v314_v11 = vpop.f32.mrf.mxu3 }
  0xb5   :  { %v2290_v37 = vadd.f32 %v314_v11, %v285_v10  ;;  %v2358_v10 = vld [vmem:[#allocation7 + $0xe0] sm:$0xff] }
  0xb7   :  { %v230_v12 = vpop.f32.mrf.mxu0  ;;  %v259_v13 = vpop.f32.mrf.mxu1  ;;  %3704 = vst [vmem:[#allocation19_spill] sm:$0xff] %v2290_v37  ;;  %v444_v46 = vmul.f32 %v2290_v37, %v2290_v37 }
  0xb8   :  { %v2258_v24 = vadd.f32 %v259_v13, %v230_v12 }
  0xba   :  { %3699 = vst [vmem:[#allocation14_spill] sm:$0xff] %v2258_v24  ;;  %v447_v36 = vmul.f32 %v2258_v24, %v2258_v24 }
  0xbe   :  { %v288_v14 = vpop.f32.mrf.mxu2  ;;  %v317_v15 = vpop.f32.mrf.mxu3 }
  0xbf   :  { %v2285_v35 = vadd.f32 %v317_v15, %v288_v14 }
  0xc1   :  { %v233_v16 = vpop.f32.mrf.mxu0  ;;  %v262_v17 = vpop.f32.mrf.mxu1  ;;  %3703 = vst [vmem:[#allocation18_spill] sm:$0xff] %v2285_v35  ;;  %v448_v45 = vmul.f32 %v2285_v35, %v2285_v35 }
  0xc2   :  { %v2255_v23 = vadd.f32 %v262_v17, %v233_v16  ;;  %v2370_v16 = vld [vmem:[#allocation7 + $0xc0] sm:$0xff] }
  0xc3   :  { %v2374_v17 = vld [vmem:[#allocation7 + $0x2e0] sm:$0xff] }
  0xc4   :  { %3698 = vst [vmem:[#allocation13_spill] sm:$0xff] %v2255_v23  ;;  %v451_v34 = vmul.f32 %v2255_v23, %v2255_v23 }
  0xc8   :  { %v291_v18 = vpop.f32.mrf.mxu2  ;;  %v320_v19 = vpop.f32.mrf.mxu3 }
  0xc9   :  { %v2274_v31 = vadd.f32 %v320_v19, %v291_v18  ;;  %v2381_v19 = vld [vmem:[#allocation7 + $0xa0] sm:$0xff] }
  0xcb   :  { %v236_v20 = vpop.f32.mrf.mxu0  ;;  %v265_v21 = vpop.f32.mrf.mxu1  ;;  %3702 = vst [vmem:[#allocation17_spill] sm:$0xff] %v2274_v31  ;;  %v452_v44 = vmul.f32 %v2274_v31, %v2274_v31 }
  0xcc   :  { %v2253_v22 = vadd.f32 %v265_v21, %v236_v20  ;;  %v2386_v21 = vld [vmem:[#allocation7 + $0x2c0] sm:$0xff] }
  0xce   :  { %3697 = vst [vmem:[#allocation12_spill] sm:$0xff] %v2253_v22  ;;  %475 = vmatpush.msra.mxu0 %v2253_v22  ;;  %v455_v26 = vmul.f32 %v2253_v22, %v2253_v22  ;;  %v2513_v22 = vld [vmem:[#allocation7 + $0x4c0] sm:$0xff] }
  0xcf   :  { %3718 = vst [vmem:[#allocation33_spill] sm:$0xff] %v2513_v22 }
  0xd0   :  { %476 = vmatpush.msra.mxu0 %v2255_v23  ;;  %v2525_v23 = vld [vmem:[#allocation7 + $0x4a0] sm:$0xff] }
  0xd1   :  { %3720 = vst [vmem:[#allocation35_spill] sm:$0xff] %v2525_v23 }
  0xd2   :  { %v294_v27 = vpop.f32.mrf.mxu2  ;;  %v323_v28 = vpop.f32.mrf.mxu3  ;;  %477 = vmatpush.msra.mxu0 %v2258_v24  ;;  %v2537_v24 = vld [vmem:[#allocation7 + $0x480] sm:$0xff] }
  0xd3   :  { %v2271_v30 = vadd.f32 %v323_v28, %v294_v27  ;;  %v2393_v27 = vld [vmem:[#allocation7 + $0x80] sm:$0xff]  ;;  %3723 = vst [vmem:[#allocation38_spill] sm:$0xff] %v2537_v24 }
  0xd4   :  { %478 = vmatpush.msra.mxu0 %v2261_v25  ;;  %v2549_v25 = vld [vmem:[#allocation7 + $0xa8] sm:$0xff] }
  0xd5   :  { %3701 = vst [vmem:[#allocation16_spill] sm:$0xff] %v2271_v30  ;;  %v2276_v32 = vpop.f32.mrf.mxu0  ;;  %v2278_v33 = vpop.f32.mrf.mxu1  ;;  %495 = vmatpush.msra.mxu1 %v2271_v30  ;;  %1978 = vmatmul.msk.f32.vlgmr.msra.gmra.mxu0 %vm459_vm0, %v2269_v29  ;;  %v456_v39 = vmul.f32 %v2271_v30, %v2271_v30  ;;  %v2510_v30 = vld [vmem:[#allocation7 + $0x348] sm:$0xff] }
  0xd6   :  { %555 = vmatpush.msrb.mxu0 %v455_v26  ;;  %v2362_v11 = vadd.f32 %v2278_v33, %v2276_v32  ;;  %v2399_v32 = vld [vmem:[#allocation7 + $0x2a0] sm:$0xff]  ;;  %3726 = vst [vmem:[#allocation41_spill] sm:$0xff] %v2549_v25 }
  0xd7   :  { %496 = vmatpush.msra.mxu1 %v2274_v31  ;;  %v2522_v31 = vld [vmem:[#allocation7 + $0x328] sm:$0xff] }
  0xd8   :  { %556 = vmatpush.msrb.mxu0 %v451_v34  ;;  %3708 = vst [vmem:[#allocation23_spill] sm:$0xff] %v2362_v11  ;;  %v445_v34 = vmul.f32 %v2362_v11, %v2362_v11 }
  0xd9   :  { %497 = vmatpush.msra.mxu1 %v2285_v35  ;;  %v2534_v35 = vld [vmem:[#allocation7 + $0x308] sm:$0xff] }
  0xda   :  { %557 = vmatpush.msrb.mxu0 %v447_v36  ;;  %v2410_v36 = vld [vmem:[#allocation7 + $0x60] sm:$0xff]  ;;  %3722 = vst [vmem:[#allocation37_spill] sm:$0xff] %v2534_v35 }
  0xdb   :  { %498 = vmatpush.msra.mxu1 %v2290_v37  ;;  %v2546_v37 = vld [vmem:[#allocation7 + $0x2e8] sm:$0xff] }
  0xdc   :  { %v2298_v40 = vpop.f32.mrf.mxu2  ;;  %v2300_v41 = vpop.f32.mrf.mxu3  ;;  %1979 = vmatmul.msk.f32.vlgmr.msra.gmra.mxu1 %vm459_vm0, %v2269_v29  ;;  %558 = vmatpush.msrb.mxu0 %v443_v38  ;;  %3725 = vst [vmem:[#allocation40_spill] sm:$0xff] %v2546_v37 }
  0xdd   :  { %v346_v42 = vpop.f32.mrf.mxu0  ;;  %v375_v43 = vpop.f32.mrf.mxu1  ;;  %575 = vmatpush.msrb.mxu1 %v456_v39  ;;  %1982 = vmatmul.msk.f32.vlgmr.msrb.gmra.mxu0 %vm459_vm0, %v2269_v29  ;;  %v2403_v33 = vadd.f32 %v2300_v41, %v2298_v40  ;;  %v2416_v39 = vld [vmem:[#allocation7 + $0x280] sm:$0xff] }
  0xde   :  { %879 = vmatpush.msra.mxu0 %v2318_v51  ;;  %v2354_v0 = vadd.f32 %v375_v43, %v346_v42  ;;  %v811_v40 = vld [vmem:[#allocation7 + $0x5e0] sm:$0xff] }
  0xdf   :  { %576 = vmatpush.msrb.mxu1 %v452_v44  ;;  %3712 = vst [vmem:[#allocation27_spill] sm:$0xff] %v2403_v33  ;;  %v2420_v41 = vld [vmem:[#allocation7 + $0x40] sm:$0xff] }
  0xe0   :  { %880 = vmatpush.msra.mxu0 %v2320_v52  ;;  %3707 = vst [vmem:[#allocation22_spill] sm:$0xff] %v2354_v0  ;;  %v449_v28 = vmul.f32 %v2354_v0, %v2354_v0  ;;  %v2425_v43 = vld [vmem:[#allocation7 + $0x260] sm:$0xff] }
  0xe1   :  { %577 = vmatpush.msrb.mxu1 %v448_v45  ;;  %v807_v44 = vld [vmem:[#allocation7 + $0x5c0] sm:$0xff] }
  0xe2   :  { %881 = vmatpush.msra.mxu0 %v2325_v54  ;;  %v2427_v45 = vld [vmem:[#allocation7 + $0x20] sm:$0xff] }
  0xe3   :  { %578 = vmatpush.msrb.mxu1 %v444_v46 }
  0xe4   :  { %v2312_v47 = vpop.f32.mrf.mxu2  ;;  %v2314_v48 = vpop.f32.mrf.mxu3  ;;  %1983 = vmatmul.msk.f32.vlgmr.msrb.gmra.mxu1 %vm459_vm0, %v2269_v29  ;;  %882 = vmatpush.msra.mxu0 %v2333_v57 }
  0xe5   :  { %v349_v49 = vpop.f32.mrf.mxu0  ;;  %v378_v50 = vpop.f32.mrf.mxu1  ;;  %899 = vmatpush.msra.mxu1 %v2323_v53  ;;  %v2390_v26 = vadd.f32 %v2314_v48, %v2312_v47  ;;  %v2433_v47 = vld [vmem:[#allocation7 + $0x240] sm:$0xff] }
  0xe6   :  { %883 = vmatpush.msra.mxu0 %v2337_v59  ;;  %v2348_v7 = vadd.f32 %v378_v50, %v349_v49  ;;  %v803_v48 = vld [vmem:[#allocation7 + $0x5a0] sm:$0xff]  ;;  %v446_v50 = vmul.f32 %v2403_v33, %v2403_v33 }
  0xe7   :  { %900 = vmatpush.msra.mxu1 %v2328_v55  ;;  %3711 = vst [vmem:[#allocation26_spill] sm:$0xff] %v2390_v26  ;;  %v450_v46 = vmul.f32 %v2390_v26, %v2390_v26  ;;  %v2435_v49 = vld [vmem:[#allocation7] sm:$0xff] }
  0xe8   :  { %3706 = vst [vmem:[#allocation21_spill] sm:$0xff] %v2348_v7  ;;  %884 = vmatpush.msra.mxu0 %v2341_v3  ;;  %v453_v20 = vmul.f32 %v2348_v7, %v2348_v7 }
  0xe9   :  { %901 = vmatpush.msra.mxu1 %v2331_v56 }
  0xea   :  { %885 = vmatpush.msra.mxu0 %v2346_v6 }
  0xeb   :  { %902 = vmatpush.msra.mxu1 %v735_v58  ;;  %v2441_v58 = vld [vmem:[#allocation7 + $0x1e8] sm:$0xff] }
  0xec   :  { %v407_v60 = vpop.f32.mrf.mxu2  ;;  %v436_v61 = vpop.f32.mrf.mxu3  ;;  %886 = vmatpush.msra.mxu0 %v2352_v9 }
  0xed   :  { %v352_v63 = vpop.f32.mrf.mxu0  ;;  %v381_v2 = vpop.f32.mrf.mxu1  ;;  %903 = vmatpush.msra.mxu1 %v731_v62  ;;  %v2376_v18 = vadd.f32 %v436_v61, %v407_v60  ;;  %v2443_v60 = vld [vmem:[#allocation7 + $0x220] sm:$0xff] }
  0xee   :  { %v2343_v4 = vadd.f32 %v381_v2, %v352_v63  ;;  %887 = vmatpush.msra.mxu0 %v2358_v10  ;;  %v799_v61 = vld [vmem:[#allocation7 + $0x580] sm:$0xff]  ;;  %v2447_v63 = vld [vmem:[#allocation7 + $0x1c8] sm:$0xff] }
  0xef   :  { %904 = vmatpush.msra.mxu1 %v727_v5  ;;  %3710 = vst [vmem:[#allocation25_spill] sm:$0xff] %v2376_v18  ;;  %v454_v42 = vmul.f32 %v2376_v18, %v2376_v18  ;;  %v875_v62 = vld [vmem:[#allocation7 + $0x7e0] sm:$0xff]  ;;  %v2453_v5 = vld [vmem:[#allocation7 + $0x3e8] sm:$0xff] }
  0xf0   :  { %3705 = vst [vmem:[#allocation20_spill] sm:$0xff] %v2343_v4  ;;  %515 = vmatpush.msra.mxu2 %v2343_v4  ;;  %v457_v12 = vmul.f32 %v2343_v4, %v2343_v4  ;;  %888 = vmatpush.msra.mxu0 %v2370_v16  ;;  %v2449_v2 = vld [vmem:[#allocation7 + $0x200] sm:$0xff] }
  0xf1   :  { %905 = vmatpush.msra.mxu1 %v723_v8  ;;  %v2455_v8 = vld [vmem:[#allocation7 + $0x560] sm:$0xff] }
  0xf2   :  { %516 = vmatpush.msra.mxu2 %v2348_v7  ;;  %889 = vmatpush.msra.mxu0 %v2381_v19  ;;  %v2507_v4 = vld [vmem:[#allocation7 + $0x740] sm:$0xff] }
  0xf3   :  { %906 = vmatpush.msra.mxu1 %v719_v1  ;;  %v2457_v1 = vld [vmem:[#allocation7 + $0x1a8] sm:$0xff]  ;;  %3717 = vst [vmem:[#allocation32_spill] sm:$0xff] %v2507_v4  ;;  %v2519_v7 = vld [vmem:[#allocation7 + $0x720] sm:$0xff] }
  0xf4   :  { %v410_v13 = vpop.f32.mrf.mxu2  ;;  %v439_v14 = vpop.f32.mrf.mxu3  ;;  %517 = vmatpush.msra.mxu2 %v2354_v0  ;;  %890 = vmatpush.msra.mxu0 %v2393_v27  ;;  %3719 = vst [vmem:[#allocation34_spill] sm:$0xff] %v2519_v7  ;;  %v2531_v0 = vld [vmem:[#allocation7 + $0x700] sm:$0xff] }
  0xf5   :  { %v2368_v15 = vadd.f32 %v439_v14, %v410_v13  ;;  %907 = vmatpush.msra.mxu1 %v2374_v17  ;;  %v2463_v13 = vld [vmem:[#allocation7 + $0x3c8] sm:$0xff]  ;;  %v2465_v14 = vld [vmem:[#allocation7 + $0x540] sm:$0xff]  ;;  %3721 = vst [vmem:[#allocation36_spill] sm:$0xff] %v2531_v0 }
  0xf6   :  { %518 = vmatpush.msra.mxu2 %v2362_v11  ;;  %891 = vmatpush.msra.mxu0 %v2410_v36  ;;  %v2543_v11 = vld [vmem:[#allocation7 + $0x6e0] sm:$0xff] }
  0xf7   :  { %3709 = vst [vmem:[#allocation24_spill] sm:$0xff] %v2368_v15  ;;  %535 = vmatpush.msra.mxu3 %v2368_v15  ;;  %1980 = vmatmul.msk.f32.vlgmr.msra.gmra.mxu2 %vm459_vm0, %v2269_v29  ;;  %v458_v38 = vmul.f32 %v2368_v15, %v2368_v15  ;;  %v2503_v15 = vld [vmem:[#allocation7 + $0x128] sm:$0xff] }
  0xf8   :  { %595 = vmatpush.msrb.mxu2 %v457_v12  ;;  %908 = vmatpush.msra.mxu1 %v2386_v21  ;;  %v2459_v12 = vld [vmem:[#allocation7 + $0x7c0] sm:$0xff]  ;;  %3724 = vst [vmem:[#allocation39_spill] sm:$0xff] %v2543_v11 }
  0xf9   :  { %536 = vmatpush.msra.mxu3 %v2376_v18  ;;  %892 = vmatpush.msra.mxu0 %v2420_v41  ;;  %v2515_v18 = vld [vmem:[#allocation7 + $0x108] sm:$0xff] }
  0xfa   :  { %596 = vmatpush.msrb.mxu2 %v453_v20  ;;  %909 = vmatpush.msra.mxu1 %v2399_v32  ;;  %v2467_v20 = vld [vmem:[#allocation7 + $0x188] sm:$0xff] }
  0xfb   :  { %537 = vmatpush.msra.mxu3 %v2390_v26  ;;  %893 = vmatpush.msra.mxu0 %v2427_v45  ;;  %v2527_v26 = vld [vmem:[#allocation7 + $0xe8] sm:$0xff] }
  0xfc   :  { %597 = vmatpush.msrb.mxu2 %v449_v28  ;;  %910 = vmatpush.msra.mxu1 %v2416_v39  ;;  %v2471_v28 = vld [vmem:[#allocation7 + $0x7a0] sm:$0xff] }
  0xfd   :  { %538 = vmatpush.msra.mxu3 %v2403_v33  ;;  %894 = vmatpush.msra.mxu0 %v2435_v49  ;;  %v2539_v33 = vld [vmem:[#allocation7 + $0xc8] sm:$0xff] }
  0xfe   :  { %1981 = vmatmul.msk.f32.vlgmr.msra.gmra.mxu3 %vm459_vm0, %v2269_v29  ;;  %598 = vmatpush.msrb.mxu2 %v445_v34  ;;  %v2474_v34 = vld [vmem:[#allocation7 + $0x3a8] sm:$0xff] }
  0xff   :  { %615 = vmatpush.msrb.mxu3 %v458_v38  ;;  %911 = vmatpush.msra.mxu1 %v2425_v43  ;;  %v2477_v38 = vld [vmem:[#allocation7 + $0x520] sm:$0xff] }
 0x100   :  { %919 = vmatpush.msra.mxu2 %v811_v40  ;;  %959 = vmatpush.msrb.mxu0 %v2441_v58  ;;  %v2479_v40 = vld [vmem:[#allocation7 + $0x168] sm:$0xff] }
 0x101   :  { %616 = vmatpush.msrb.mxu3 %v454_v42  ;;  %912 = vmatpush.msra.mxu1 %v2433_v47  ;;  %v2483_v42 = vld [vmem:[#allocation7 + $0x780] sm:$0xff] }
 0x102   :  { %920 = vmatpush.msra.mxu2 %v807_v44  ;;  %960 = vmatpush.msrb.mxu0 %v2447_v63  ;;  %3713 = vst [vmem:[#allocation28_spill] sm:$0xff] %v2483_v42  ;;  %v2486_v44 = vld [vmem:[#allocation7 + $0x388] sm:$0xff] }
 0x103   :  { %617 = vmatpush.msrb.mxu3 %v450_v46  ;;  %913 = vmatpush.msra.mxu1 %v2443_v60  ;;  %v2489_v46 = vld [vmem:[#allocation7 + $0x500] sm:$0xff] }
 0x104   :  { %921 = vmatpush.msra.mxu2 %v803_v48  ;;  %961 = vmatpush.msrb.mxu0 %v2457_v1  ;;  %3714 = vst [vmem:[#allocation29_spill] sm:$0xff] %v2489_v46  ;;  %v2491_v48 = vld [vmem:[#allocation7 + $0x148] sm:$0xff] }
 0x105   :  { %618 = vmatpush.msrb.mxu3 %v446_v50  ;;  %914 = vmatpush.msra.mxu1 %v2449_v2  ;;  %v2495_v50 = vld [vmem:[#allocation7 + $0x760] sm:$0xff] }
 0x106   :  { %922 = vmatpush.msra.mxu2 %v799_v61  ;;  %962 = vmatpush.msrb.mxu0 %v2467_v20  ;;  %3715 = vst [vmem:[#allocation30_spill] sm:$0xff] %v2495_v50  ;;  %v2498_v61 = vld [vmem:[#allocation7 + $0x368] sm:$0xff] }
 0x107   :  { %939 = vmatpush.msra.mxu3 %v875_v62  ;;  %979 = vmatpush.msrb.mxu1 %v2453_v5  ;;  %v2501_v62 = vld [vmem:[#allocation7 + $0x4e0] sm:$0xff] }
 0x108   :  { %923 = vmatpush.msra.mxu2 %v2455_v8  ;;  %963 = vmatpush.msrb.mxu0 %v2479_v40  ;;  %3716 = vst [vmem:[#allocation31_spill] sm:$0xff] %v2501_v62 }
 0x109   :  { %940 = vmatpush.msra.mxu3 %v2459_v12  ;;  %980 = vmatpush.msrb.mxu1 %v2463_v13 }
 0x10a   :  { %924 = vmatpush.msra.mxu2 %v2465_v14  ;;  %964 = vmatpush.msrb.mxu0 %v2491_v48 }
 0x10b   :  { %941 = vmatpush.msra.mxu3 %v2471_v28  ;;  %981 = vmatpush.msrb.mxu1 %v2474_v34 }
 0x10c   :  { %925 = vmatpush.msra.mxu2 %v2477_v38  ;;  %965 = vmatpush.msrb.mxu0 %v2503_v15 }
 0x10d   :  { %942 = vmatpush.msra.mxu3 %v2483_v42  ;;  %982 = vmatpush.msrb.mxu1 %v2486_v44  ;;  %v2918_v42 = vld [vmem:[#allocation7 + $0x790] sm:$0xff] }
 0x10e   :  { %926 = vmatpush.msra.mxu2 %v2489_v46  ;;  %966 = vmatpush.msrb.mxu0 %v2515_v18  ;;  %v2756_v46 = vld [vmem:[#allocation7 + $0x628] sm:$0xff]  ;;  %3842 = vst [vmem:[#allocation157_spill] sm:$0xff] %v2918_v42 }
 0x10f   :  { %943 = vmatpush.msra.mxu3 %v2495_v50  ;;  %983 = vmatpush.msrb.mxu1 %v2498_v61  ;;  %v2728_v50 = vld [vmem:[#allocation7 + $0x170] sm:$0xff]  ;;  %3791 = vst [vmem:[#allocation106_spill] sm:$0xff] %v2756_v46 }
 0x110   :  { %927 = vmatpush.msra.mxu2 %v2501_v62  ;;  %967 = vmatpush.msrb.mxu0 %v2527_v26  ;;  %v2588_v62 = vld [vmem:[#allocation7 + $0x460] sm:$0xff]  ;;  %3782 = vst [vmem:[#allocation97_spill] sm:$0xff] %v2728_v50 }
 0x111   :  { %944 = vmatpush.msra.mxu3 %v2507_v4  ;;  %984 = vmatpush.msrb.mxu1 %v2510_v30  ;;  %v2577_v4 = vld [vmem:[#allocation7 + $0x28] sm:$0xff]  ;;  %3736 = vst [vmem:[#allocation51_spill] sm:$0xff] %v2588_v62 }
 0x112   :  { %928 = vmatpush.msra.mxu2 %v2513_v22  ;;  %968 = vmatpush.msrb.mxu0 %v2539_v33  ;;  %v2573_v22 = vld [vmem:[#allocation7 + $0x48] sm:$0xff]  ;;  %3733 = vst [vmem:[#allocation48_spill] sm:$0xff] %v2577_v4 }
 0x113   :  { %945 = vmatpush.msra.mxu3 %v2519_v7  ;;  %985 = vmatpush.msrb.mxu1 %v2522_v31  ;;  %v2554_v7 = vld [vmem:[#allocation7 + $0x2c8] sm:$0xff]  ;;  %3732 = vst [vmem:[#allocation47_spill] sm:$0xff] %v2573_v22 }
 0x114   :  { %929 = vmatpush.msra.mxu2 %v2525_v23  ;;  %3727 = vst [vmem:[#allocation42_spill] sm:$0xff] %v2554_v7  ;;  %v2557_v23 = vld [vmem:[#allocation7 + $0x88] sm:$0xff]  ;;  %969 = vmatpush.msrb.mxu0 %v2549_v25  ;;  %v2906_v25 = vld [vmem:[#allocation7 + $0x7b0] sm:$0xff] }
 0x115   :  { %946 = vmatpush.msra.mxu3 %v2531_v0  ;;  %986 = vmatpush.msrb.mxu1 %v2534_v35  ;;  %3728 = vst [vmem:[#allocation43_spill] sm:$0xff] %v2557_v23  ;;  %v2563_v0 = vld [vmem:[#allocation7 + $0x2a8] sm:$0xff] }
 0x116   :  { %930 = vmatpush.msra.mxu2 %v2537_v24  ;;  %3729 = vst [vmem:[#allocation44_spill] sm:$0xff] %v2563_v0  ;;  %1985 = vmatmul.msk.f32.vlgmr.msrb.gmra.mxu3 %vm459_vm0, %v2269_v29  ;;  %v2567_v24 = vld [vmem:[#allocation7 + $0x68] sm:$0xff] }
 0x117   :  { %947 = vmatpush.msra.mxu3 %v2543_v11  ;;  %987 = vmatpush.msrb.mxu1 %v2546_v37  ;;  %3730 = vst [vmem:[#allocation45_spill] sm:$0xff] %v2567_v24  ;;  %v2571_v11 = vld [vmem:[#allocation7 + $0x288] sm:$0xff] }
 0x118   :  { %1984 = vmatmul.msk.f32.vlgmr.msrb.gmra.mxu2 %vm459_vm0, %v2269_v29  ;;  %970 = vmatpush.msrb.mxu0 %v2557_v23  ;;  %3731 = vst [vmem:[#allocation46_spill] sm:$0xff] %v2571_v11  ;;  %v2582_v29 = vld [vmem:[#allocation7 + $0x8] sm:$0xff]  ;;  %vm1633_vm0 = vcmask 15360  }
 0x119   :  { %988 = vmatpush.msrb.mxu1 %v2554_v7  ;;  %3734 = vst [vmem:[#allocation49_spill] sm:$0xff] %v2582_v29  ;;  %v2584_v7 = vld [vmem:[#allocation7 + $0x268] sm:$0xff]  ;;  %931 = vmatpush.msra.mxu2 %v2588_v62  ;;  %v2623_v62 = vld [vmem:[#allocation7 + $0x640] sm:$0xff] }
 0x11a   :  { %971 = vmatpush.msrb.mxu0 %v2567_v24  ;;  %3735 = vst [vmem:[#allocation50_spill] sm:$0xff] %v2584_v7  ;;  %v2607_v24 = vld [vmem:[#allocation7 + $0x680] sm:$0xff]  ;;  %v2709_v37 = vld [vmem:[#allocation7 + $0x448] sm:$0xff] }
 0x11b   :  { %989 = vmatpush.msrb.mxu1 %v2563_v0  ;;  %v2590_v0 = vld [vmem:[#allocation7 + $0x6c0] sm:$0xff]  ;;  %3743 = vst [vmem:[#allocation58_spill] sm:$0xff] %v2607_v24  ;;  %v2718_v23 = vld [vmem:[#allocation7 + $0x428] sm:$0xff] }
 0x11c   :  { %972 = vmatpush.msrb.mxu0 %v2573_v22  ;;  %3737 = vst [vmem:[#allocation52_spill] sm:$0xff] %v2590_v0  ;;  %948 = vmatpush.msra.mxu3 %v2590_v0  ;;  %v2596_v22 = vld [vmem:[#allocation7 + $0x440] sm:$0xff]  ;;  %v2612_v0 = vld [vmem:[#allocation7 + $0x208] sm:$0xff] }
 0x11d   :  { %990 = vmatpush.msrb.mxu1 %v2571_v11  ;;  %v2594_v11 = vld [vmem:[#allocation7 + $0x248] sm:$0xff]  ;;  %3739 = vst [vmem:[#allocation54_spill] sm:$0xff] %v2596_v22  ;;  %932 = vmatpush.msra.mxu2 %v2596_v22  ;;  %v2617_v22 = vld [vmem:[#allocation7 + $0x660] sm:$0xff] }
 0x11e   :  { %973 = vmatpush.msrb.mxu0 %v2577_v4  ;;  %3738 = vst [vmem:[#allocation53_spill] sm:$0xff] %v2594_v11  ;;  %v2598_v4 = vld [vmem:[#allocation7 + $0x6a0] sm:$0xff] }
 0x11f   :  { %991 = vmatpush.msrb.mxu1 %v2584_v7  ;;  %3740 = vst [vmem:[#allocation55_spill] sm:$0xff] %v2598_v4  ;;  %949 = vmatpush.msra.mxu3 %v2598_v4  ;;  %v2603_v7 = vld [vmem:[#allocation7 + $0x228] sm:$0xff] }
 0x120   :  { %974 = vmatpush.msrb.mxu0 %v2582_v29  ;;  %3741 = vst [vmem:[#allocation56_spill] sm:$0xff] %v2603_v7  ;;  %v2605_v29 = vld [vmem:[#allocation7 + $0x420] sm:$0xff]  ;;  %v2621_v4 = vld [vmem:[#allocation7 + $0x5e8] sm:$0xff] }
 0x121   :  { %992 = vmatpush.msrb.mxu1 %v2594_v11  ;;  %3742 = vst [vmem:[#allocation57_spill] sm:$0xff] %v2605_v29  ;;  %933 = vmatpush.msra.mxu2 %v2605_v29  ;;  %v2615_v11 = vld [vmem:[#allocation7 + $0x400] sm:$0xff] }
 0x122   :  { %950 = vmatpush.msra.mxu3 %v2607_v24  ;;  %3744 = vst [vmem:[#allocation59_spill] sm:$0xff] %v2612_v0  ;;  %v2627_v24 = vld [vmem:[#allocation7 + $0x5c8] sm:$0xff]  ;;  %v2629_v29 = vld [vmem:[#allocation7 + $0x620] sm:$0xff] }
 0x123   :  { %993 = vmatpush.msrb.mxu1 %v2603_v7  ;;  %3745 = vst [vmem:[#allocation60_spill] sm:$0xff] %v2615_v11  ;;  %934 = vmatpush.msra.mxu2 %v2615_v11  ;;  %v2635_v11 = vld [vmem:[#allocation7 + $0x600] sm:$0xff] }
 0x124   :  { %3746 = vst [vmem:[#allocation61_spill] sm:$0xff] %v2617_v22  ;;  %951 = vmatpush.msra.mxu3 %v2617_v22  ;;  %v2639_v22 = vld [vmem:[#allocation7 + $0x588] sm:$0xff] }
 0x125   :  { %994 = vmatpush.msrb.mxu1 %v2612_v0  ;;  %3747 = vst [vmem:[#allocation62_spill] sm:$0xff] %v2621_v4  ;;  %999 = vmatpush.msrb.mxu2 %v2621_v4  ;;  %v2633_v0 = vld [vmem:[#allocation7 + $0x5a8] sm:$0xff] }
 0x126   :  { %3748 = vst [vmem:[#allocation63_spill] sm:$0xff] %v2623_v62  ;;  %952 = vmatpush.msra.mxu3 %v2623_v62  ;;  %v2641_v4 = vld [vmem:[#allocation7 + $0x7e8] sm:$0xff] }
 0x127   :  { %3749 = vst [vmem:[#allocation64_spill] sm:$0xff] %v2627_v24  ;;  %1000 = vmatpush.msrb.mxu2 %v2627_v24  ;;  %v2645_v62 = vld [vmem:[#allocation7 + $0x568] sm:$0xff] }
 0x128   :  { %3750 = vst [vmem:[#allocation65_spill] sm:$0xff] %v2629_v29  ;;  %953 = vmatpush.msra.mxu3 %v2629_v29  ;;  %v2647_v24 = vld [vmem:[#allocation7 + $0x7c8] sm:$0xff] }
 0x129   :  { %3751 = vst [vmem:[#allocation66_spill] sm:$0xff] %v2633_v0  ;;  %1001 = vmatpush.msrb.mxu2 %v2633_v0  ;;  %v2651_v29 = vld [vmem:[#allocation7 + $0x548] sm:$0xff] }
 0x12a   :  { %3752 = vst [vmem:[#allocation67_spill] sm:$0xff] %v2635_v11  ;;  %954 = vmatpush.msra.mxu3 %v2635_v11  ;;  %v2653_v0 = vld [vmem:[#allocation7 + $0x7a8] sm:$0xff] }
 0x12b   :  { %3753 = vst [vmem:[#allocation68_spill] sm:$0xff] %v2639_v22  ;;  %1002 = vmatpush.msrb.mxu2 %v2639_v22  ;;  %v2657_v11 = vld [vmem:[#allocation7 + $0x528] sm:$0xff] }
 0x12c   :  { %3754 = vst [vmem:[#allocation69_spill] sm:$0xff] %v2641_v4  ;;  %1019 = vmatpush.msrb.mxu3 %v2641_v4  ;;  %v2659_v22 = vld [vmem:[#allocation7 + $0x788] sm:$0xff] }
 0x12d   :  { %3755 = vst [vmem:[#allocation70_spill] sm:$0xff] %v2645_v62  ;;  %1003 = vmatpush.msrb.mxu2 %v2645_v62  ;;  %v2663_v4 = vld [vmem:[#allocation7 + $0x508] sm:$0xff] }
 0x12e   :  { %3756 = vst [vmem:[#allocation71_spill] sm:$0xff] %v2647_v24  ;;  %1020 = vmatpush.msrb.mxu3 %v2647_v24  ;;  %v2665_v62 = vld [vmem:[#allocation7 + $0x768] sm:$0xff] }
 0x12f   :  { %3757 = vst [vmem:[#allocation72_spill] sm:$0xff] %v2651_v29  ;;  %1004 = vmatpush.msrb.mxu2 %v2651_v29  ;;  %v2669_v24 = vld [vmem:[#allocation7 + $0x4e8] sm:$0xff] }
 0x130   :  { %3758 = vst [vmem:[#allocation73_spill] sm:$0xff] %v2653_v0  ;;  %1021 = vmatpush.msrb.mxu3 %v2653_v0  ;;  %v2671_v29 = vld [vmem:[#allocation7 + $0x748] sm:$0xff] }
 0x131   :  { %3759 = vst [vmem:[#allocation74_spill] sm:$0xff] %v2657_v11  ;;  %1005 = vmatpush.msrb.mxu2 %v2657_v11  ;;  %v2675_v0 = vld [vmem:[#allocation7 + $0x4c8] sm:$0xff] }
 0x132   :  { %3760 = vst [vmem:[#allocation75_spill] sm:$0xff] %v2659_v22  ;;  %1022 = vmatpush.msrb.mxu3 %v2659_v22  ;;  %v2677_v11 = vld [vmem:[#allocation7 + $0x728] sm:$0xff] }
 0x133   :  { %3761 = vst [vmem:[#allocation76_spill] sm:$0xff] %v2663_v4  ;;  %1006 = vmatpush.msrb.mxu2 %v2663_v4  ;;  %v2681_v22 = vld [vmem:[#allocation7 + $0x4a8] sm:$0xff] }
 0x134   :  { %3762 = vst [vmem:[#allocation77_spill] sm:$0xff] %v2665_v62  ;;  %1023 = vmatpush.msrb.mxu3 %v2665_v62  ;;  %v2683_v4 = vld [vmem:[#allocation7 + $0x708] sm:$0xff]  ;;  %v2687_v62 = vld [vmem:[#allocation7 + $0x1f0] sm:$0xff] }
 0x135   :  { %3763 = vst [vmem:[#allocation78_spill] sm:$0xff] %v2669_v24  ;;  %1007 = vmatpush.msrb.mxu2 %v2669_v24  ;;  %v2689_v24 = vld [vmem:[#allocation7 + $0x488] sm:$0xff] }
 0x136   :  { %3764 = vst [vmem:[#allocation79_spill] sm:$0xff] %v2671_v29  ;;  %1024 = vmatpush.msrb.mxu3 %v2671_v29  ;;  %v2691_v29 = vld [vmem:[#allocation7 + $0x6e8] sm:$0xff] }
 0x137   :  { %3765 = vst [vmem:[#allocation80_spill] sm:$0xff] %v2675_v0  ;;  %1008 = vmatpush.msrb.mxu2 %v2675_v0  ;;  %v2700_v0 = vld [vmem:[#allocation7 + $0x468] sm:$0xff] }
 0x138   :  { %3766 = vst [vmem:[#allocation81_spill] sm:$0xff] %v2677_v11  ;;  %1025 = vmatpush.msrb.mxu3 %v2677_v11  ;;  %v2698_v11 = vld [vmem:[#allocation7 + $0x1d0] sm:$0xff] }
 0x139   :  { %3767 = vst [vmem:[#allocation82_spill] sm:$0xff] %v2681_v22  ;;  %1009 = vmatpush.msrb.mxu2 %v2681_v22  ;;  %v2702_v22 = vld [vmem:[#allocation7 + $0x6c8] sm:$0xff] }
 0x13a   :  { %3768 = vst [vmem:[#allocation83_spill] sm:$0xff] %v2683_v4  ;;  %1026 = vmatpush.msrb.mxu3 %v2683_v4  ;;  %v2706_v4 = vld [vmem:[#allocation7 + $0x1b0] sm:$0xff] }
 0x13b   :  { %3769 = vst [vmem:[#allocation84_spill] sm:$0xff] %v2687_v62  ;;  %1010 = vmatpush.msrb.mxu2 %v2689_v24 }
 0x13c   :  { %3770 = vst [vmem:[#allocation85_spill] sm:$0xff] %v2689_v24  ;;  %1027 = vmatpush.msrb.mxu3 %v2691_v29  ;;  %v2711_v24 = vld [vmem:[#allocation7 + $0x6a8] sm:$0xff] }
 0x13d   :  { %3771 = vst [vmem:[#allocation86_spill] sm:$0xff] %v2691_v29  ;;  %1011 = vmatpush.msrb.mxu2 %v2700_v0  ;;  %v2715_v29 = vld [vmem:[#allocation7 + $0x190] sm:$0xff] }
 0x13e   :  { %3772 = vst [vmem:[#allocation87_spill] sm:$0xff] %v2698_v11  ;;  %1028 = vmatpush.msrb.mxu3 %v2702_v22 }
 0x13f   :  { %3773 = vst [vmem:[#allocation88_spill] sm:$0xff] %v2700_v0  ;;  %1012 = vmatpush.msrb.mxu2 %v2709_v37  ;;  %v2723_v0 = vld [vmem:[#allocation7 + $0x3f0] sm:$0xff] }
 0x140   :  { %3774 = vst [vmem:[#allocation89_spill] sm:$0xff] %v2702_v22  ;;  %1029 = vmatpush.msrb.mxu3 %v2711_v24 }
 0x141   :  { %3775 = vst [vmem:[#allocation90_spill] sm:$0xff] %v2706_v4  ;;  %1013 = vmatpush.msrb.mxu2 %v2718_v23 }
 0x142   :  { %3776 = vst [vmem:[#allocation91_spill] sm:$0xff] %v2709_v37  ;;  %v2735_v37 = vld [vmem:[#allocation7 + $0x408] sm:$0xff] }
 0x143   :  { %3777 = vst [vmem:[#allocation92_spill] sm:$0xff] %v2711_v24  ;;  %v2733_v24 = vld [vmem:[#allocation7 + $0x3d0] sm:$0xff]  ;;  %1014 = vmatpush.msrb.mxu2 %v2735_v37 }
 0x144   :  { %3778 = vst [vmem:[#allocation93_spill] sm:$0xff] %v2715_v29 }
 0x145   :  { %3779 = vst [vmem:[#allocation94_spill] sm:$0xff] %v2718_v23  ;;  %v2744_v23 = vld [vmem:[#allocation7 + $0x3b0] sm:$0xff] }
 0x146   :  { %3781 = vst [vmem:[#allocation96_spill] sm:$0xff] %v2723_v0 }
 0x147   :  { %3783 = vst [vmem:[#allocation98_spill] sm:$0xff] %v2733_v24 }
 0x148   :  { %3784 = vst [vmem:[#allocation99_spill] sm:$0xff] %v2735_v37  ;;  %v2763_v37 = vld [vmem:[#allocation7 + $0x370] sm:$0xff] }
 0x149   :  { %3787 = vst [vmem:[#allocation102_spill] sm:$0xff] %v2744_v23 }
 0x14a   :  { %3793 = vst [vmem:[#allocation108_spill] sm:$0xff] %v2763_v37 }
 0x14b   :  { %3838 = vst [vmem:[#allocation153_spill] sm:$0xff] %v2906_v25 }
 0x152   :  { %v2693_v7 = vpop.f32.mrf.mxu0 }
 0x153   :  { %895 = vmatmul.f32.vlgmr.msra.gmra.mxu0 %v2693_v7 }
 0x154   :  { %1039 = vmatpush.msra.mxu0 %v2687_v62  ;;  %v2720_v62 = vld [vmem:[#allocation7 + $0x688] sm:$0xff] }
 0x155   :  { %3780 = vst [vmem:[#allocation95_spill] sm:$0xff] %v2720_v62  ;;  %1030 = vmatpush.msrb.mxu3 %v2720_v62  ;;  %v2747_v62 = vld [vmem:[#allocation7 + $0x648] sm:$0xff] }
 0x156   :  { %1040 = vmatpush.msra.mxu0 %v2698_v11  ;;  %v2737_v11 = vld [vmem:[#allocation7 + $0x668] sm:$0xff]  ;;  %3788 = vst [vmem:[#allocation103_spill] sm:$0xff] %v2747_v62 }
 0x157   :  { %3785 = vst [vmem:[#allocation100_spill] sm:$0xff] %v2737_v11  ;;  %1031 = vmatpush.msrb.mxu3 %v2737_v11  ;;  %v2769_v11 = vld [vmem:[#allocation7 + $0x608] sm:$0xff] }
 0x158   :  { %1041 = vmatpush.msra.mxu0 %v2706_v4  ;;  %v2740_v4 = vld [vmem:[#allocation7 + $0x150] sm:$0xff]  ;;  %3795 = vst [vmem:[#allocation110_spill] sm:$0xff] %v2769_v11 }
 0x159   :  { %v2726_v22 = vpop.f32.mrf.mxu1  ;;  %3786 = vst [vmem:[#allocation101_spill] sm:$0xff] %v2740_v4  ;;  %1032 = vmatpush.msrb.mxu3 %v2747_v62  ;;  %v2776_v62 = vld [vmem:[#allocation7 + $0xd0] sm:$0xff] }
 0x15a   :  { %915 = vmatmul.f32.vlgmr.msra.gmra.mxu1 %v2726_v22  ;;  %1042 = vmatpush.msra.mxu0 %v2715_v29  ;;  %v2750_v29 = vld [vmem:[#allocation7 + $0x130] sm:$0xff]  ;;  %3797 = vst [vmem:[#allocation112_spill] sm:$0xff] %v2776_v62 }
 0x15b   :  { %1059 = vmatpush.msra.mxu1 %v2723_v0  ;;  %975 = vmatmul.f32.vlgmr.msrb.gmra.mxu0 %v2693_v7  ;;  %3789 = vst [vmem:[#allocation104_spill] sm:$0xff] %v2750_v29  ;;  %v2754_v0 = vld [vmem:[#allocation7 + $0x390] sm:$0xff] }
 0x15c   :  { %1043 = vmatpush.msra.mxu0 %v2728_v50  ;;  %3790 = vst [vmem:[#allocation105_spill] sm:$0xff] %v2754_v0  ;;  %v2759_v50 = vld [vmem:[#allocation7 + $0x110] sm:$0xff]  ;;  %1033 = vmatpush.msrb.mxu3 %v2756_v46 }
 0x15d   :  { %1060 = vmatpush.msra.mxu1 %v2733_v24  ;;  %3792 = vst [vmem:[#allocation107_spill] sm:$0xff] %v2759_v50  ;;  %v2766_v24 = vld [vmem:[#allocation7 + $0xf0] sm:$0xff] }
 0x15e   :  { %1044 = vmatpush.msra.mxu0 %v2740_v4  ;;  %3794 = vst [vmem:[#allocation109_spill] sm:$0xff] %v2766_v24  ;;  %v2772_v4 = vld [vmem:[#allocation7 + $0x350] sm:$0xff]  ;;  %1034 = vmatpush.msrb.mxu3 %v2769_v11 }
 0x15f   :  { %1061 = vmatpush.msra.mxu1 %v2744_v23  ;;  %3796 = vst [vmem:[#allocation111_spill] sm:$0xff] %v2772_v4  ;;  %v2783_v46 = vld [vmem:[#allocation7 + $0xb0] sm:$0xff]  ;;  %v2854_v23 = vld [vmem:[#allocation7 + $0x158] sm:$0xff] }
 0x160   :  { %1045 = vmatpush.msra.mxu0 %v2750_v29  ;;  %3799 = vst [vmem:[#allocation114_spill] sm:$0xff] %v2783_v46  ;;  %v2789_v29 = vld [vmem:[#allocation7 + $0x90] sm:$0xff] }
 0x161   :  { %1062 = vmatpush.msra.mxu1 %v2754_v0  ;;  %v2780_v0 = vld [vmem:[#allocation7 + $0x330] sm:$0xff]  ;;  %3801 = vst [vmem:[#allocation116_spill] sm:$0xff] %v2789_v29 }
 0x162   :  { %1046 = vmatpush.msra.mxu0 %v2759_v50  ;;  %995 = vmatmul.f32.vlgmr.msrb.gmra.mxu1 %v2726_v22  ;;  %3798 = vst [vmem:[#allocation113_spill] sm:$0xff] %v2780_v0  ;;  %v2786_v50 = vld [vmem:[#allocation7 + $0x310] sm:$0xff] }
 0x163   :  { %1063 = vmatpush.msra.mxu1 %v2763_v37  ;;  %3800 = vst [vmem:[#allocation115_spill] sm:$0xff] %v2786_v50  ;;  %v2792_v37 = vld [vmem:[#allocation7 + $0x2f0] sm:$0xff] }
 0x164   :  { %1047 = vmatpush.msra.mxu0 %v2766_v24  ;;  %3802 = vst [vmem:[#allocation117_spill] sm:$0xff] %v2792_v37  ;;  %v2795_v11 = vld [vmem:[#allocation7 + $0x70] sm:$0xff]  ;;  %v2818_v24 = vld [vmem:[#allocation7 + $0x1f8] sm:$0xff] }
 0x165   :  { %1064 = vmatpush.msra.mxu1 %v2772_v4  ;;  %3803 = vst [vmem:[#allocation118_spill] sm:$0xff] %v2795_v11  ;;  %v2798_v4 = vld [vmem:[#allocation7 + $0x2d0] sm:$0xff] }
 0x166   :  { %1048 = vmatpush.msra.mxu0 %v2776_v62  ;;  %3804 = vst [vmem:[#allocation119_spill] sm:$0xff] %v2798_v4  ;;  %v2801_v62 = vld [vmem:[#allocation7 + $0x50] sm:$0xff] }
 0x167   :  { %1065 = vmatpush.msra.mxu1 %v2780_v0  ;;  %3805 = vst [vmem:[#allocation120_spill] sm:$0xff] %v2801_v62  ;;  %v2804_v0 = vld [vmem:[#allocation7 + $0x2b0] sm:$0xff] }
 0x168   :  { %1049 = vmatpush.msra.mxu0 %v2783_v46  ;;  %3806 = vst [vmem:[#allocation121_spill] sm:$0xff] %v2804_v0  ;;  %v2807_v46 = vld [vmem:[#allocation7 + $0x30] sm:$0xff] }
 0x169   :  { %1066 = vmatpush.msra.mxu1 %v2786_v50  ;;  %3807 = vst [vmem:[#allocation122_spill] sm:$0xff] %v2807_v46  ;;  %v2810_v50 = vld [vmem:[#allocation7 + $0x290] sm:$0xff] }
 0x16a   :  { %1050 = vmatpush.msra.mxu0 %v2789_v29  ;;  %3808 = vst [vmem:[#allocation123_spill] sm:$0xff] %v2810_v50  ;;  %v2813_v29 = vld [vmem:[#allocation7 + $0x10] sm:$0xff] }
 0x16b   :  { %1067 = vmatpush.msra.mxu1 %v2792_v37  ;;  %3809 = vst [vmem:[#allocation124_spill] sm:$0xff] %v2813_v29  ;;  %v2816_v37 = vld [vmem:[#allocation7 + $0x270] sm:$0xff] }
 0x16c   :  { %1051 = vmatpush.msra.mxu0 %v2795_v11  ;;  %3810 = vst [vmem:[#allocation125_spill] sm:$0xff] %v2816_v37  ;;  %v2824_v11 = vld [vmem:[#allocation7 + $0x1d8] sm:$0xff] }
 0x16d   :  { %1068 = vmatpush.msra.mxu1 %v2798_v4  ;;  %3811 = vst [vmem:[#allocation126_spill] sm:$0xff] %v2818_v24  ;;  %v2822_v4 = vld [vmem:[#allocation7 + $0x250] sm:$0xff] }
 0x16e   :  { %1052 = vmatpush.msra.mxu0 %v2801_v62  ;;  %3812 = vst [vmem:[#allocation127_spill] sm:$0xff] %v2822_v4  ;;  %v2830_v62 = vld [vmem:[#allocation7 + $0x1b8] sm:$0xff] }
 0x16f   :  { %1069 = vmatpush.msra.mxu1 %v2804_v0  ;;  %3813 = vst [vmem:[#allocation128_spill] sm:$0xff] %v2824_v11  ;;  %v2828_v0 = vld [vmem:[#allocation7 + $0x230] sm:$0xff] }
 0x170   :  { %1053 = vmatpush.msra.mxu0 %v2807_v46  ;;  %3814 = vst [vmem:[#allocation129_spill] sm:$0xff] %v2828_v0  ;;  %v2847_v46 = vld [vmem:[#allocation7 + $0x5f0] sm:$0xff] }
 0x171   :  { %1070 = vmatpush.msra.mxu1 %v2810_v50  ;;  %3815 = vst [vmem:[#allocation130_spill] sm:$0xff] %v2830_v62  ;;  %v2835_v50 = vld [vmem:[#allocation7 + $0x210] sm:$0xff] }
 0x172   :  { %1054 = vmatpush.msra.mxu0 %v2813_v29  ;;  %3816 = vst [vmem:[#allocation131_spill] sm:$0xff] %v2835_v50  ;;  %v2837_v29 = vld [vmem:[#allocation7 + $0x198] sm:$0xff] }
 0x173   :  { %1071 = vmatpush.msra.mxu1 %v2816_v37  ;;  %1055 = vmatmul.f32.vlgmr.msra.gmra.mxu0 %v2693_v7  ;;  %3817 = vst [vmem:[#allocation132_spill] sm:$0xff] %v2837_v29  ;;  %v2841_v37 = vld [vmem:[#allocation7 + $0x3f8] sm:$0xff] }
 0x174   :  { %1119 = vmatpush.msrb.mxu0 %v2818_v24  ;;  %3818 = vst [vmem:[#allocation133_spill] sm:$0xff] %v2841_v37  ;;  %v2843_v24 = vld [vmem:[#allocation7 + $0x178] sm:$0xff] }
 0x175   :  { %1072 = vmatpush.msra.mxu1 %v2822_v4  ;;  %3819 = vst [vmem:[#allocation134_spill] sm:$0xff] %v2843_v24  ;;  %v2849_v4 = vld [vmem:[#allocation7 + $0x3d8] sm:$0xff] }
 0x176   :  { %1120 = vmatpush.msrb.mxu0 %v2824_v11  ;;  %3820 = vst [vmem:[#allocation135_spill] sm:$0xff] %v2847_v46 }
 0x177   :  { %1073 = vmatpush.msra.mxu1 %v2828_v0  ;;  %3821 = vst [vmem:[#allocation136_spill] sm:$0xff] %v2849_v4  ;;  %v2860_v0 = vld [vmem:[#allocation7 + $0x3b8] sm:$0xff] }
 0x178   :  { %1121 = vmatpush.msrb.mxu0 %v2830_v62  ;;  %3822 = vst [vmem:[#allocation137_spill] sm:$0xff] %v2854_v23  ;;  %v2858_v62 = vld [vmem:[#allocation7 + $0x5d0] sm:$0xff] }
 0x179   :  { %1074 = vmatpush.msra.mxu1 %v2835_v50  ;;  %3823 = vst [vmem:[#allocation138_spill] sm:$0xff] %v2858_v62  ;;  %v2867_v50 = vld [vmem:[#allocation7 + $0x5b0] sm:$0xff] }
 0x17a   :  { %1122 = vmatpush.msrb.mxu0 %v2837_v29  ;;  %v2851_v11 = vpop.f32.mrf.mxu2  ;;  %3824 = vst [vmem:[#allocation139_spill] sm:$0xff] %v2860_v0  ;;  %v2864_v29 = vld [vmem:[#allocation7 + $0x138] sm:$0xff]  ;;  %1075 = vmatmul.f32.vlgmr.msra.gmra.mxu1 %v2726_v22 }
 0x17b   :  { %1139 = vmatpush.msrb.mxu1 %v2841_v37  ;;  %935 = vmatmul.f32.vlgmr.msra.gmra.mxu2 %v2851_v11  ;;  %3825 = vst [vmem:[#allocation140_spill] sm:$0xff] %v2864_v29  ;;  %v2869_v37 = vld [vmem:[#allocation7 + $0x398] sm:$0xff] }
 0x17c   :  { %1123 = vmatpush.msrb.mxu0 %v2843_v24  ;;  %1079 = vmatpush.msra.mxu2 %v2847_v46  ;;  %3826 = vst [vmem:[#allocation141_spill] sm:$0xff] %v2867_v50  ;;  %v2874_v24 = vld [vmem:[#allocation7 + $0x118] sm:$0xff]  ;;  %v2877_v46 = vld [vmem:[#allocation7 + $0x590] sm:$0xff] }
 0x17d   :  { %1140 = vmatpush.msrb.mxu1 %v2849_v4  ;;  %3827 = vst [vmem:[#allocation142_spill] sm:$0xff] %v2869_v37  ;;  %v2883_v4 = vld [vmem:[#allocation7 + $0x378] sm:$0xff] }
 0x17e   :  { %1124 = vmatpush.msrb.mxu0 %v2854_v23  ;;  %1080 = vmatpush.msra.mxu2 %v2858_v62  ;;  %3828 = vst [vmem:[#allocation143_spill] sm:$0xff] %v2874_v24  ;;  %v2881_v23 = vld [vmem:[#allocation7 + $0x7f0] sm:$0xff]  ;;  %v2888_v62 = vld [vmem:[#allocation7 + $0xf8] sm:$0xff] }
 0x17f   :  { %1141 = vmatpush.msrb.mxu1 %v2860_v0  ;;  %3829 = vst [vmem:[#allocation144_spill] sm:$0xff] %v2877_v46  ;;  %v2894_v0 = vld [vmem:[#allocation7 + $0x7d0] sm:$0xff] }
 0x180   :  { %1125 = vmatpush.msrb.mxu0 %v2864_v29  ;;  %1081 = vmatpush.msra.mxu2 %v2867_v50  ;;  %3830 = vst [vmem:[#allocation145_spill] sm:$0xff] %v2881_v23  ;;  %v2892_v29 = vld [vmem:[#allocation7 + $0x570] sm:$0xff]  ;;  %v2900_v50 = vld [vmem:[#allocation7 + $0xd8] sm:$0xff] }
 0x181   :  { %1142 = vmatpush.msrb.mxu1 %v2869_v37  ;;  %3831 = vst [vmem:[#allocation146_spill] sm:$0xff] %v2883_v4  ;;  %v2885_v35 = vpop.f32.mrf.mxu3  ;;  %v2898_v37 = vld [vmem:[#allocation7 + $0x358] sm:$0xff] }
 0x182   :  { %1126 = vmatpush.msrb.mxu0 %v2874_v24  ;;  %3832 = vst [vmem:[#allocation147_spill] sm:$0xff] %v2888_v62  ;;  %955 = vmatmul.f32.vlgmr.msra.gmra.mxu3 %v2885_v35  ;;  %v2904_v24 = vld [vmem:[#allocation7 + $0x550] sm:$0xff] }
 0x183   :  { %1082 = vmatpush.msra.mxu2 %v2877_v46  ;;  %3833 = vst [vmem:[#allocation148_spill] sm:$0xff] %v2892_v29  ;;  %1099 = vmatpush.msra.mxu3 %v2881_v23  ;;  %v2910_v46 = vld [vmem:[#allocation7 + $0x338] sm:$0xff] }
 0x184   :  { %3834 = vst [vmem:[#allocation149_spill] sm:$0xff] %v2894_v0  ;;  %1143 = vmatpush.msrb.mxu1 %v2883_v4  ;;  %1015 = vmatmul.f32.vlgmr.msrb.gmra.mxu2 %v2851_v11  ;;  %v2912_v23 = vld [vmem:[#allocation7 + $0xb8] sm:$0xff]  ;;  %v2916_v4 = vld [vmem:[#allocation7 + $0x530] sm:$0xff] }
 0x185   :  { %3835 = vst [vmem:[#allocation150_spill] sm:$0xff] %v2898_v37  ;;  %1127 = vmatpush.msrb.mxu0 %v2888_v62  ;;  %1083 = vmatpush.msra.mxu2 %v2892_v29  ;;  %v2922_v62 = vld [vmem:[#allocation7 + $0x318] sm:$0xff]  ;;  %v2928_v29 = vld [vmem:[#allocation7 + $0x770] sm:$0xff] }
 0x186   :  { %3836 = vst [vmem:[#allocation151_spill] sm:$0xff] %v2900_v50  ;;  %1100 = vmatpush.msra.mxu3 %v2894_v0  ;;  %1144 = vmatpush.msrb.mxu1 %v2898_v37  ;;  %v2926_v0 = vld [vmem:[#allocation7 + $0x510] sm:$0xff]  ;;  %v2934_v37 = vld [vmem:[#allocation7 + $0x2f8] sm:$0xff] }
 0x187   :  { %3837 = vst [vmem:[#allocation152_spill] sm:$0xff] %v2904_v24  ;;  %1128 = vmatpush.msrb.mxu0 %v2900_v50  ;;  %1084 = vmatpush.msra.mxu2 %v2904_v24  ;;  %v2932_v50 = vld [vmem:[#allocation7 + $0x98] sm:$0xff] }
 0x188   :  { %3839 = vst [vmem:[#allocation154_spill] sm:$0xff] %v2910_v46  ;;  %1101 = vmatpush.msra.mxu3 %v2906_v25  ;;  %1145 = vmatpush.msrb.mxu1 %v2910_v46  ;;  %v2938_v25 = vld [vmem:[#allocation7 + $0x4f0] sm:$0xff]  ;;  %v2956_v24 = vld [vmem:[#allocation7 + $0x58] sm:$0xff] }
 0x189   :  { %3840 = vst [vmem:[#allocation155_spill] sm:$0xff] %v2912_v23  ;;  %1129 = vmatpush.msrb.mxu0 %v2912_v23  ;;  %1085 = vmatpush.msra.mxu2 %v2916_v4  ;;  %v2940_v46 = vld [vmem:[#allocation7 + $0x750] sm:$0xff]  ;;  %v2944_v23 = vld [vmem:[#allocation7 + $0x78] sm:$0xff] }
 0x18a   :  { %3841 = vst [vmem:[#allocation156_spill] sm:$0xff] %v2916_v4  ;;  %1102 = vmatpush.msra.mxu3 %v2918_v42  ;;  %1146 = vmatpush.msrb.mxu1 %v2922_v62  ;;  %v2946_v4 = vld [vmem:[#allocation7 + $0x2d8] sm:$0xff]  ;;  %v2950_v42 = vld [vmem:[#allocation7 + $0x4d0] sm:$0xff] }
 0x18b   :  { %3843 = vst [vmem:[#allocation158_spill] sm:$0xff] %v2922_v62  ;;  %1035 = vmatmul.f32.vlgmr.msrb.gmra.mxu3 %v2885_v35  ;;  %1086 = vmatpush.msra.mxu2 %v2926_v0  ;;  %v2952_v62 = vld [vmem:[#allocation7 + $0x730] sm:$0xff] }
 0x18c   :  { %3844 = vst [vmem:[#allocation159_spill] sm:$0xff] %v2926_v0  ;;  %1103 = vmatpush.msra.mxu3 %v2928_v29  ;;  %1130 = vmatpush.msrb.mxu0 %v2932_v50  ;;  %v2958_v0 = vld [vmem:[#allocation7 + $0x2b8] sm:$0xff] }
 0x18d   :  { %3845 = vst [vmem:[#allocation160_spill] sm:$0xff] %v2928_v29  ;;  %1147 = vmatpush.msrb.mxu1 %v2934_v37  ;;  %1087 = vmatpush.msra.mxu2 %v2938_v25  ;;  %v2962_v29 = vld [vmem:[#allocation7 + $0x4b0] sm:$0xff] }
 0x18e   :  { %3846 = vst [vmem:[#allocation161_spill] sm:$0xff] %v2932_v50  ;;  %1104 = vmatpush.msra.mxu3 %v2940_v46  ;;  %1131 = vmatpush.msrb.mxu0 %v2944_v23  ;;  %v2964_v50 = vld [vmem:[#allocation7 + $0x710] sm:$0xff] }
 0x18f   :  { %3847 = vst [vmem:[#allocation162_spill] sm:$0xff] %v2934_v37  ;;  %1148 = vmatpush.msrb.mxu1 %v2946_v4  ;;  %1088 = vmatpush.msra.mxu2 %v2950_v42  ;;  %v2968_v37 = vld [vmem:[#allocation7 + $0x38] sm:$0xff] }
 0x190   :  { %3848 = vst [vmem:[#allocation163_spill] sm:$0xff] %v2938_v25  ;;  %1105 = vmatpush.msra.mxu3 %v2952_v62  ;;  %v2970_v25 = vld [vmem:[#allocation7 + $0x298] sm:$0xff]  ;;  %1132 = vmatpush.msrb.mxu0 %v2956_v24 }
 0x191   :  { %3849 = vst [vmem:[#allocation164_spill] sm:$0xff] %v2940_v46  ;;  %1149 = vmatpush.msrb.mxu1 %v2958_v0  ;;  %v2974_v46 = vld [vmem:[#allocation7 + $0x490] sm:$0xff]  ;;  %1089 = vmatpush.msra.mxu2 %v2962_v29 }
 0x192   :  { %3850 = vst [vmem:[#allocation165_spill] sm:$0xff] %v2944_v23  ;;  %v2976_v23 = vld [vmem:[#allocation7 + $0x6f0] sm:$0xff]  ;;  %1106 = vmatpush.msra.mxu3 %v2964_v50  ;;  %1133 = vmatpush.msrb.mxu0 %v2968_v37 }
 0x193   :  { %3851 = vst [vmem:[#allocation166_spill] sm:$0xff] %v2946_v4  ;;  %v2980_v4 = vld [vmem:[#allocation7 + $0x18] sm:$0xff]  ;;  %1150 = vmatpush.msrb.mxu1 %v2970_v25  ;;  %1090 = vmatpush.msra.mxu2 %v2974_v46 }
 0x194   :  { %3852 = vst [vmem:[#allocation167_spill] sm:$0xff] %v2950_v42  ;;  %v2982_v42 = vld [vmem:[#allocation7 + $0x278] sm:$0xff]  ;;  %1107 = vmatpush.msra.mxu3 %v2976_v23  ;;  %1134 = vmatpush.msrb.mxu0 %v2980_v4 }
 0x195   :  { %3853 = vst [vmem:[#allocation168_spill] sm:$0xff] %v2952_v62  ;;  %v2986_v62 = vld [vmem:[#allocation7 + $0x470] sm:$0xff]  ;;  %1151 = vmatpush.msrb.mxu1 %v2982_v42  ;;  %1135 = vmatmul.f32.vlgmr.msrb.gmra.mxu0 %v2693_v7 }
 0x196   :  { %3854 = vst [vmem:[#allocation169_spill] sm:$0xff] %v2956_v24  ;;  %v2988_v24 = vld [vmem:[#allocation7 + $0x6d0] sm:$0xff]  ;;  %1091 = vmatpush.msra.mxu2 %v2986_v62  ;;  %1199 = vmatpush.msra.mxu0 %v2318_v51 }
 0x197   :  { %3855 = vst [vmem:[#allocation170_spill] sm:$0xff] %v2958_v0  ;;  %v2992_v0 = vld [vmem:[#allocation7 + $0x258] sm:$0xff]  ;;  %1108 = vmatpush.msra.mxu3 %v2988_v24  ;;  %v3020_v7 = vld [vmem:[#allocation7 + $0x670] sm:$0xff] }
 0x198   :  { %3856 = vst [vmem:[#allocation171_spill] sm:$0xff] %v2964_v50  ;;  %v2996_v50 = vld [vmem:[#allocation7 + $0x450] sm:$0xff]  ;;  %1152 = vmatpush.msrb.mxu1 %v2992_v0  ;;  %1200 = vmatpush.msra.mxu0 %v2320_v52 }
 0x199   :  { %3857 = vst [vmem:[#allocation172_spill] sm:$0xff] %v2968_v37  ;;  %v3002_v37 = vld [vmem:[#allocation7 + $0x238] sm:$0xff]  ;;  %1092 = vmatpush.msra.mxu2 %v2996_v50  ;;  %v3026_v51 = vld [vmem:[#allocation7 + $0x650] sm:$0xff] }
 0x19a   :  { %3858 = vst [vmem:[#allocation173_spill] sm:$0xff] %v2970_v25  ;;  %v3000_v25 = vld [vmem:[#allocation7 + $0x6b0] sm:$0xff]  ;;  %1153 = vmatpush.msrb.mxu1 %v3002_v37  ;;  %1201 = vmatpush.msra.mxu0 %v2325_v54  ;;  %v3038_v54 = vld [vmem:[#allocation7 + $0x5d8] sm:$0xff] }
 0x19b   :  { %3859 = vst [vmem:[#allocation174_spill] sm:$0xff] %v2976_v23  ;;  %v3006_v23 = vld [vmem:[#allocation7 + $0x430] sm:$0xff]  ;;  %1109 = vmatpush.msra.mxu3 %v3000_v25 }
 0x19c   :  { %3860 = vst [vmem:[#allocation175_spill] sm:$0xff] %v2980_v4  ;;  %v3012_v4 = vld [vmem:[#allocation7 + $0x218] sm:$0xff]  ;;  %1093 = vmatpush.msra.mxu2 %v3006_v23  ;;  %1202 = vmatpush.msra.mxu0 %v2333_v57  ;;  %v3034_v52 = vld [vmem:[#allocation7 + $0x630] sm:$0xff] }
 0x19d   :  { %3861 = vst [vmem:[#allocation176_spill] sm:$0xff] %v2982_v42  ;;  %v3010_v42 = vld [vmem:[#allocation7 + $0x690] sm:$0xff]  ;;  %1154 = vmatpush.msrb.mxu1 %v3012_v4  ;;  %v3054_v57 = vld [vmem:[#allocation7 + $0x7f8] sm:$0xff] }
 0x19e   :  { %3862 = vst [vmem:[#allocation177_spill] sm:$0xff] %v2988_v24  ;;  %v3016_v24 = vld [vmem:[#allocation7 + $0x410] sm:$0xff]  ;;  %1110 = vmatpush.msra.mxu3 %v3010_v42  ;;  %1155 = vmatmul.f32.vlgmr.msrb.gmra.mxu1 %v2726_v22  ;;  %v3046_v22 = vld [vmem:[#allocation7 + $0x5b8] sm:$0xff] }
 0x19f   :  { %3863 = vst [vmem:[#allocation178_spill] sm:$0xff] %v3002_v37  ;;  %1094 = vmatpush.msra.mxu2 %v3016_v24  ;;  %v3030_v37 = vld [vmem:[#allocation7 + $0x5f8] sm:$0xff]  ;;  %1219 = vmatpush.msra.mxu1 %v2323_v53 }
 0x1a0   :  { %3864 = vst [vmem:[#allocation179_spill] sm:$0xff] %v3020_v7  ;;  %1111 = vmatpush.msra.mxu3 %v3020_v7  ;;  %1095 = vmatmul.f32.vlgmr.msra.gmra.mxu2 %v2851_v11  ;;  %v3042_v7 = vld [vmem:[#allocation7 + $0x610] sm:$0xff]  ;;  %v3052_v53 = vld [vmem:[#allocation7 + $0x598] sm:$0xff] }
 0x1a1   :  { %3865 = vst [vmem:[#allocation180_spill] sm:$0xff] %v3034_v52  ;;  %1159 = vmatpush.msrb.mxu2 %v3030_v37  ;;  %1203 = vmatpush.msra.mxu0 %v2337_v59  ;;  %v3059_v59 = vld [vmem:[#allocation7 + $0x578] sm:$0xff] }
 0x1a2   :  { %1112 = vmatpush.msra.mxu3 %v3026_v51  ;;  %3866 = vst [vmem:[#allocation181_spill] sm:$0xff] %v3042_v7  ;;  %1220 = vmatpush.msra.mxu1 %v2328_v55  ;;  %v2042_v55 = vld [vmem:[#allocation7 + $0x380] sm:$0xff] }
 0x1a3   :  { %1160 = vmatpush.msrb.mxu2 %v3038_v54  ;;  %1204 = vmatpush.msra.mxu0 %v2341_v3  ;;  %3867 = vst [vmem:[#allocation182_spill] sm:$0xff] %v3052_v53  ;;  %v3066_v3 = vld [vmem:[#allocation7 + $0x558] sm:$0xff] }
 0x1a4   :  { %1113 = vmatpush.msra.mxu3 %v3034_v52  ;;  %1221 = vmatpush.msra.mxu1 %v2331_v56  ;;  %3868 = vst [vmem:[#allocation183_spill] sm:$0xff] %v3059_v59  ;;  %v3061_v52 = vld [vmem:[#allocation7 + $0x7d8] sm:$0xff]  ;;  %v2043_v56 = vld [vmem:[#allocation7 + $0x360] sm:$0xff] }
 0x1a5   :  { %1161 = vmatpush.msrb.mxu2 %v3046_v22  ;;  %1205 = vmatpush.msra.mxu0 %v2346_v6  ;;  %3869 = vst [vmem:[#allocation184_spill] sm:$0xff] %v3066_v3  ;;  %v2044_v6 = vld [vmem:[#allocation7 + $0x340] sm:$0xff] }
 0x1a6   :  { %1114 = vmatpush.msra.mxu3 %v3042_v7  ;;  %1222 = vmatpush.msra.mxu1 %v2042_v55  ;;  %v3068_v7 = vld [vmem:[#allocation7 + $0x7b8] sm:$0xff] }
 0x1a7   :  { %1115 = vmatmul.f32.vlgmr.msra.gmra.mxu3 %v2885_v35  ;;  %1162 = vmatpush.msrb.mxu2 %v3052_v53  ;;  %v3073_v55 = vld [vmem:[#allocation7 + $0x538] sm:$0xff] }
 0x1a8   :  { %1179 = vmatpush.msrb.mxu3 %v3054_v57  ;;  %1206 = vmatpush.msra.mxu0 %v2352_v9  ;;  %v3075_v53 = vld [vmem:[#allocation7 + $0x798] sm:$0xff]  ;;  %v2045_v9 = vld [vmem:[#allocation7 + $0x320] sm:$0xff] }
 0x1a9   :  { %1223 = vmatpush.msra.mxu1 %v2043_v56  ;;  %1163 = vmatpush.msrb.mxu2 %v3059_v59  ;;  %v3080_v56 = vld [vmem:[#allocation7 + $0x518] sm:$0xff] }
 0x1aa   :  { %1180 = vmatpush.msrb.mxu3 %v3061_v52  ;;  %1207 = vmatpush.msra.mxu0 %v2358_v10  ;;  %v3082_v59 = vld [vmem:[#allocation7 + $0x778] sm:$0xff]  ;;  %v2046_v10 = vld [vmem:[#allocation7 + $0x300] sm:$0xff] }
 0x1ab   :  { %1224 = vmatpush.msra.mxu1 %v2044_v6  ;;  %1164 = vmatpush.msrb.mxu2 %v3066_v3  ;;  %v3087_v6 = vld [vmem:[#allocation7 + $0x4f8] sm:$0xff] }
 0x1ac   :  { %1181 = vmatpush.msrb.mxu3 %v3068_v7  ;;  %1208 = vmatpush.msra.mxu0 %v2370_v16  ;;  %v3089_v3 = vld [vmem:[#allocation7 + $0x758] sm:$0xff] }
 0x1ad   :  { %1225 = vmatpush.msra.mxu1 %v2045_v9  ;;  %1165 = vmatpush.msrb.mxu2 %v3073_v55  ;;  %v3095_v16 = vld [vmem:[#allocation7 + $0x4d8] sm:$0xff] }
 0x1ae   :  { %1182 = vmatpush.msrb.mxu3 %v3075_v53  ;;  %1209 = vmatpush.msra.mxu0 %v2381_v19  ;;  %v3097_v9 = vld [vmem:[#allocation7 + $0x738] sm:$0xff] }
 0x1af   :  { %1226 = vmatpush.msra.mxu1 %v2046_v10  ;;  %1166 = vmatpush.msrb.mxu2 %v3080_v56  ;;  %v3103_v19 = vld [vmem:[#allocation7 + $0x4b8] sm:$0xff] }
 0x1b0   :  { %1183 = vmatpush.msrb.mxu3 %v3082_v59  ;;  %1210 = vmatpush.msra.mxu0 %v2393_v27  ;;  %v3105_v10 = vld [vmem:[#allocation7 + $0x718] sm:$0xff] }
 0x1b1   :  { %1227 = vmatpush.msra.mxu1 %v2374_v17  ;;  %1167 = vmatpush.msrb.mxu2 %v3087_v6  ;;  %v3111_v17 = vld [vmem:[#allocation7 + $0x498] sm:$0xff] }
 0x1b2   :  { %1184 = vmatpush.msrb.mxu3 %v3089_v3  ;;  %1211 = vmatpush.msra.mxu0 %v2410_v36  ;;  %v3113_v27 = vld [vmem:[#allocation7 + $0x6f8] sm:$0xff] }
 0x1b3   :  { %1228 = vmatpush.msra.mxu1 %v2386_v21  ;;  %1168 = vmatpush.msrb.mxu2 %v3095_v16  ;;  %v3119_v21 = vld [vmem:[#allocation7 + $0x478] sm:$0xff] }
 0x1b4   :  { %1185 = vmatpush.msrb.mxu3 %v3097_v9  ;;  %1212 = vmatpush.msra.mxu0 %v2420_v41  ;;  %v3121_v36 = vld [vmem:[#allocation7 + $0x6d8] sm:$0xff] }
 0x1b5   :  { %1229 = vmatpush.msra.mxu1 %v2399_v32  ;;  %1169 = vmatpush.msrb.mxu2 %v3103_v19  ;;  %v3127_v32 = vld [vmem:[#allocation7 + $0x458] sm:$0xff] }
 0x1b6   :  { %1186 = vmatpush.msrb.mxu3 %v3105_v10  ;;  %1213 = vmatpush.msra.mxu0 %v2427_v45  ;;  %v3129_v41 = vld [vmem:[#allocation7 + $0x6b8] sm:$0xff] }
 0x1b7   :  { %1230 = vmatpush.msra.mxu1 %v2416_v39  ;;  %1170 = vmatpush.msrb.mxu2 %v3111_v17  ;;  %v3135_v39 = vld [vmem:[#allocation7 + $0x438] sm:$0xff] }
 0x1b8   :  { %1187 = vmatpush.msrb.mxu3 %v3113_v27  ;;  %1214 = vmatpush.msra.mxu0 %v2435_v49  ;;  %v3137_v45 = vld [vmem:[#allocation7 + $0x698] sm:$0xff] }
 0x1b9   :  { %1231 = vmatpush.msra.mxu1 %v2425_v43  ;;  %1171 = vmatpush.msrb.mxu2 %v3119_v21  ;;  %v3143_v43 = vld [vmem:[#allocation7 + $0x418] sm:$0xff] }
 0x1ba   :  { %1188 = vmatpush.msrb.mxu3 %v3121_v36  ;;  %1279 = vmatpush.msrb.mxu0 %v2441_v58  ;;  %v3145_v49 = vld [vmem:[#allocation7 + $0x678] sm:$0xff] }
 0x1bb   :  { %1232 = vmatpush.msra.mxu1 %v2433_v47  ;;  %1172 = vmatpush.msrb.mxu2 %v3127_v32  ;;  %v3151_v47 = vld [vmem:[#allocation7 + $0x658] sm:$0xff] }
 0x1bc   :  { %1189 = vmatpush.msrb.mxu3 %v3129_v41  ;;  %1280 = vmatpush.msrb.mxu0 %v2447_v63  ;;  %v3157_v58 = vld [vmem:[#allocation7 + $0x638] sm:$0xff] }
 0x1bd   :  { %1233 = vmatpush.msra.mxu1 %v2443_v60  ;;  %1173 = vmatpush.msrb.mxu2 %v3135_v39  ;;  %v2047_v60 = vld [vmem:[#allocation7 + $0x5e0] sm:$0xff]  ;;  %v3162_v63 = vld [vmem:[#allocation7 + $0x618] sm:$0xff] }
 0x1be   :  { %1190 = vmatpush.msrb.mxu3 %v3137_v45  ;;  %1281 = vmatpush.msrb.mxu0 %v2457_v1  ;;  %v2051_v1 = vld [vmem:[#allocation7 + $0x7e0] sm:$0xff] }
 0x1bf   :  { %1234 = vmatpush.msra.mxu1 %v2449_v2  ;;  %1174 = vmatpush.msrb.mxu2 %v3143_v43  ;;  %v2048_v2 = vld [vmem:[#allocation7 + $0x5c0] sm:$0xff] }
 0x1c0   :  { %1191 = vmatpush.msrb.mxu3 %v3145_v49  ;;  %1282 = vmatpush.msrb.mxu0 %v2467_v20  ;;  %v3881_v20 = vld [vmem:[#allocation33_spill] sm:$0xff] }
 0x1c1   :  { %1299 = vmatpush.msrb.mxu1 %v2453_v5  ;;  %1175 = vmatmul.f32.vlgmr.msrb.gmra.mxu2 %v2851_v11  ;;  %v2049_v11 = vld [vmem:[#allocation7 + $0x5a0] sm:$0xff] }
 0x1c2   :  { %1192 = vmatpush.msrb.mxu3 %v3151_v47  ;;  %1239 = vmatpush.msra.mxu2 %v2047_v60  ;;  %v2050_v5 = vld [vmem:[#allocation7 + $0x580] sm:$0xff]  ;;  %v3202_v60 = vpop.f32.mrf.mxu0 }
 0x1c3   :  { %1283 = vmatpush.msrb.mxu0 %v2479_v40  ;;  %1300 = vmatpush.msrb.mxu1 %v2463_v13  ;;  %v3877_v13 = vld [vmem:[#allocation31_spill] sm:$0xff] }
 0x1c4   :  { %1193 = vmatpush.msrb.mxu3 %v3157_v58  ;;  %1240 = vmatpush.msra.mxu2 %v2048_v2  ;;  %v3885_v40 = vld [vmem:[#allocation35_spill] sm:$0xff]  ;;  %v3889_v2 = vld [vmem:[#allocation38_spill] sm:$0xff] }
 0x1c5   :  { %1284 = vmatpush.msrb.mxu0 %v2491_v48  ;;  %1301 = vmatpush.msrb.mxu1 %v2474_v34  ;;  %v3883_v34 = vld [vmem:[#allocation47_spill] sm:$0xff]  ;;  %v3887_v48 = vld [vmem:[#allocation48_spill] sm:$0xff] }
 0x1c6   :  { %1194 = vmatpush.msrb.mxu3 %v3162_v63  ;;  %1241 = vmatpush.msra.mxu2 %v2049_v11  ;;  %v3890_v11 = vld [vmem:[#allocation39_spill] sm:$0xff] }
 0x1c7   :  { %1285 = vmatpush.msrb.mxu0 %v2503_v15  ;;  %1302 = vmatpush.msrb.mxu1 %v2486_v44  ;;  %v3871_v15 = vld [vmem:[#allocation41_spill] sm:$0xff]  ;;  %v3886_v44 = vld [vmem:[#allocation36_spill] sm:$0xff] }
 0x1c8   :  { %1195 = vmatmul.f32.vlgmr.msrb.gmra.mxu3 %v2885_v35  ;;  %1242 = vmatpush.msra.mxu2 %v2050_v5  ;;  %v3870_v35 = vld [vmem:[#allocation28_spill] sm:$0xff]  ;;  %v3891_v5 = vld [vmem:[#allocation49_spill] sm:$0xff] }
 0x1c9   :  { %1259 = vmatpush.msra.mxu3 %v2051_v1  ;;  %1286 = vmatpush.msrb.mxu0 %v2515_v18  ;;  %v3872_v18 = vld [vmem:[#allocation37_spill] sm:$0xff]  ;;  %v3892_v1 = vld [vmem:[#allocation50_spill] sm:$0xff] }
 0x1ca   :  { %1303 = vmatpush.msrb.mxu1 %v2498_v61  ;;  %1243 = vmatpush.msra.mxu2 %v2455_v8  ;;  %v3873_v8 = vld [vmem:[#allocation29_spill] sm:$0xff]  ;;  %v3888_v61 = vld [vmem:[#allocation46_spill] sm:$0xff] }
 0x1cb   :  { %1260 = vmatpush.msra.mxu3 %v2459_v12  ;;  %1287 = vmatpush.msrb.mxu0 %v2527_v26  ;;  %v3874_v26 = vld [vmem:[#allocation30_spill] sm:$0xff]  ;;  %v3876_v12 = vld [vmem:[#allocation40_spill] sm:$0xff] }
 0x1cc   :  { %1304 = vmatpush.msrb.mxu1 %v2510_v30  ;;  %1244 = vmatpush.msra.mxu2 %v2465_v14  ;;  %v3875_v30 = vld [vmem:[#allocation43_spill] sm:$0xff]  ;;  %v3880_v14 = vld [vmem:[#allocation42_spill] sm:$0xff] }
 0x1cd   :  { %1261 = vmatpush.msra.mxu3 %v2471_v28  ;;  %1288 = vmatpush.msrb.mxu0 %v2539_v33  ;;  %v3878_v33 = vld [vmem:[#allocation32_spill] sm:$0xff]  ;;  %v3882_v28 = vld [vmem:[#allocation34_spill] sm:$0xff] }
 0x1ce   :  { %1305 = vmatpush.msrb.mxu1 %v2522_v31  ;;  %1245 = vmatpush.msra.mxu2 %v2477_v38  ;;  %v3879_v31 = vld [vmem:[#allocation45_spill] sm:$0xff]  ;;  %v3884_v38 = vld [vmem:[#allocation44_spill] sm:$0xff] }
 0x1cf   :  { %1262 = vmatpush.msra.mxu3 %v3870_v35  ;;  %1289 = vmatpush.msrb.mxu0 %v3871_v15  ;;  %v3893_v35 = vld [vmem:[#allocation51_spill] sm:$0xff]  ;;  %v3894_v15 = vld [vmem:[#allocation52_spill] sm:$0xff] }
 0x1d0   :  { %1306 = vmatpush.msrb.mxu1 %v3872_v18  ;;  %1246 = vmatpush.msra.mxu2 %v3873_v8  ;;  %v3895_v18 = vld [vmem:[#allocation84_spill] sm:$0xff]  ;;  %v3896_v8 = vld [vmem:[#allocation53_spill] sm:$0xff] }
 0x1d1   :  { %1263 = vmatpush.msra.mxu3 %v3874_v26  ;;  %1290 = vmatpush.msrb.mxu0 %v3875_v30  ;;  %v3897_v26 = vld [vmem:[#allocation54_spill] sm:$0xff]  ;;  %v3898_v30 = vld [vmem:[#allocation55_spill] sm:$0xff] }
 0x1d2   :  { %1307 = vmatpush.msrb.mxu1 %v3876_v12  ;;  %1247 = vmatpush.msra.mxu2 %v3877_v13  ;;  %v3899_v12 = vld [vmem:[#allocation87_spill] sm:$0xff]  ;;  %v3900_v13 = vld [vmem:[#allocation56_spill] sm:$0xff] }
 0x1d3   :  { %1264 = vmatpush.msra.mxu3 %v3878_v33  ;;  %1291 = vmatpush.msrb.mxu0 %v3879_v31  ;;  %v3901_v33 = vld [vmem:[#allocation57_spill] sm:$0xff]  ;;  %v3218_v31 = vpop.f32.mrf.mxu1 }
 0x1d4   :  { %1308 = vmatpush.msrb.mxu1 %v3880_v14  ;;  %1248 = vmatpush.msra.mxu2 %v3881_v20  ;;  %v3902_v14 = vld [vmem:[#allocation58_spill] sm:$0xff] }
 0x1d5   :  { %1265 = vmatpush.msra.mxu3 %v3882_v28  ;;  %1292 = vmatpush.msrb.mxu0 %v3883_v34  ;;  %v3903_v20 = vld [vmem:[#allocation90_spill] sm:$0xff]  ;;  %v3904_v28 = vld [vmem:[#allocation59_spill] sm:$0xff]  ;;  %v3905_v34 = vld [vmem:[#allocation60_spill] sm:$0xff] }
 0x1d6   :  { %1309 = vmatpush.msrb.mxu1 %v3884_v38  ;;  %1249 = vmatpush.msra.mxu2 %v3885_v40  ;;  %v3906_v38 = vld [vmem:[#allocation61_spill] sm:$0xff] }
 0x1d7   :  { %1266 = vmatpush.msra.mxu3 %v3886_v44  ;;  %1293 = vmatpush.msrb.mxu0 %v3887_v48  ;;  %v3907_v40 = vld [vmem:[#allocation93_spill] sm:$0xff]  ;;  %v3908_v44 = vld [vmem:[#allocation96_spill] sm:$0xff]  ;;  %v3909_v48 = vld [vmem:[#allocation62_spill] sm:$0xff] }
 0x1d8   :  { %1310 = vmatpush.msrb.mxu1 %v3888_v61  ;;  %1250 = vmatpush.msra.mxu2 %v3889_v2  ;;  %v3910_v61 = vld [vmem:[#allocation63_spill] sm:$0xff]  ;;  %v3911_v2 = vld [vmem:[#allocation97_spill] sm:$0xff] }
 0x1d9   :  { %1267 = vmatpush.msra.mxu3 %v3890_v11  ;;  %1294 = vmatpush.msrb.mxu0 %v3891_v5  ;;  %v3912_v11 = vld [vmem:[#allocation98_spill] sm:$0xff]  ;;  %v3232_v5 = vpop.f32.mrf.mxu2 }
 0x1da   :  { %1311 = vmatpush.msrb.mxu1 %v3892_v1  ;;  %1215 = vmatmul.f32.vlgmr.msra.gmra.mxu0 %v3202_v60  ;;  %v3913_v1 = vld [vmem:[#allocation64_spill] sm:$0xff] }
 0x1db   :  { %1251 = vmatpush.msra.mxu2 %v3893_v35  ;;  %1268 = vmatpush.msra.mxu3 %v3894_v15  ;;  %v3914_v35 = vld [vmem:[#allocation65_spill] sm:$0xff] }
 0x1dc   :  { %1359 = vmatpush.msra.mxu0 %v3895_v18  ;;  %1312 = vmatpush.msrb.mxu1 %v3896_v8  ;;  %v3915_v15 = vld [vmem:[#allocation101_spill] sm:$0xff]  ;;  %v3916_v18 = vld [vmem:[#allocation102_spill] sm:$0xff]  ;;  %v3238_v8 = vpop.f32.mrf.mxu3 }
 0x1dd   :  { %1252 = vmatpush.msra.mxu2 %v3897_v26  ;;  %1269 = vmatpush.msra.mxu3 %v3898_v30  ;;  %v3917_v26 = vld [vmem:[#allocation67_spill] sm:$0xff]  ;;  %v3918_v30 = vld [vmem:[#allocation66_spill] sm:$0xff] }
 0x1de   :  { %1360 = vmatpush.msra.mxu0 %v3899_v12  ;;  %1313 = vmatpush.msrb.mxu1 %v3900_v13  ;;  %v3919_v12 = vld [vmem:[#allocation104_spill] sm:$0xff]  ;;  %v3920_v13 = vld [vmem:[#allocation105_spill] sm:$0xff] }
 0x1df   :  { %1253 = vmatpush.msra.mxu2 %v3901_v33  ;;  %1270 = vmatpush.msra.mxu3 %v3902_v14  ;;  %v3921_v33 = vld [vmem:[#allocation68_spill] sm:$0xff]  ;;  %v3922_v14 = vld [vmem:[#allocation69_spill] sm:$0xff] }
 0x1e0   :  { %1361 = vmatpush.msra.mxu0 %v3903_v20  ;;  %1314 = vmatpush.msrb.mxu1 %v3904_v28  ;;  %v3923_v20 = vld [vmem:[#allocation107_spill] sm:$0xff]  ;;  %v3924_v28 = vld [vmem:[#allocation108_spill] sm:$0xff] }
 0x1e1   :  { %1254 = vmatpush.msra.mxu2 %v3905_v34  ;;  %1235 = vmatmul.f32.vlgmr.msra.gmra.mxu1 %v3218_v31  ;;  %v3925_v34 = vld [vmem:[#allocation70_spill] sm:$0xff] }
 0x1e2   :  { %1271 = vmatpush.msra.mxu3 %v3906_v38  ;;  %1362 = vmatpush.msra.mxu0 %v3907_v40  ;;  %v3926_v38 = vld [vmem:[#allocation71_spill] sm:$0xff]  ;;  %v3927_v40 = vld [vmem:[#allocation109_spill] sm:$0xff] }
 0x1e3   :  { %1379 = vmatpush.msra.mxu1 %v3908_v44  ;;  %1319 = vmatpush.msrb.mxu2 %v3909_v48  ;;  %v3928_v44 = vld [vmem:[#allocation111_spill] sm:$0xff]  ;;  %v3929_v48 = vld [vmem:[#allocation72_spill] sm:$0xff] }
 0x1e4   :  { %1272 = vmatpush.msra.mxu3 %v3910_v61  ;;  %1363 = vmatpush.msra.mxu0 %v3911_v2  ;;  %v3930_v61 = vld [vmem:[#allocation73_spill] sm:$0xff]  ;;  %v3931_v2 = vld [vmem:[#allocation112_spill] sm:$0xff] }
 0x1e5   :  { %1380 = vmatpush.msra.mxu1 %v3912_v11  ;;  %1320 = vmatpush.msrb.mxu2 %v3913_v1  ;;  %v3932_v11 = vld [vmem:[#allocation113_spill] sm:$0xff]  ;;  %v3933_v1 = vld [vmem:[#allocation74_spill] sm:$0xff] }
 0x1e6   :  { %1273 = vmatpush.msra.mxu3 %v3914_v35  ;;  %1364 = vmatpush.msra.mxu0 %v3915_v15  ;;  %v3934_v35 = vld [vmem:[#allocation75_spill] sm:$0xff]  ;;  %v3935_v15 = vld [vmem:[#allocation114_spill] sm:$0xff] }
 0x1e7   :  { %1381 = vmatpush.msra.mxu1 %v3916_v18  ;;  %1255 = vmatmul.f32.vlgmr.msra.gmra.mxu2 %v3232_v5  ;;  %v3936_v18 = vld [vmem:[#allocation115_spill] sm:$0xff] }
 0x1e8   :  { %1274 = vmatpush.msra.mxu3 %v3917_v26  ;;  %1321 = vmatpush.msrb.mxu2 %v3918_v30  ;;  %v3937_v26 = vld [vmem:[#allocation76_spill] sm:$0xff]  ;;  %v3938_v30 = vld [vmem:[#allocation77_spill] sm:$0xff] }
 0x1e9   :  { %1365 = vmatpush.msra.mxu0 %v3919_v12  ;;  %1382 = vmatpush.msra.mxu1 %v3920_v13  ;;  %v3939_v12 = vld [vmem:[#allocation116_spill] sm:$0xff]  ;;  %v3940_v13 = vld [vmem:[#allocation117_spill] sm:$0xff] }
 0x1ea   :  { %1275 = vmatmul.f32.vlgmr.msra.gmra.mxu3 %v3238_v8  ;;  %1322 = vmatpush.msrb.mxu2 %v3921_v33  ;;  %v3941_v33 = vld [vmem:[#allocation78_spill] sm:$0xff] }
 0x1eb   :  { %1339 = vmatpush.msrb.mxu3 %v3922_v14  ;;  %1366 = vmatpush.msra.mxu0 %v3923_v20  ;;  %v3942_v14 = vld [vmem:[#allocation79_spill] sm:$0xff]  ;;  %v3943_v20 = vld [vmem:[#allocation118_spill] sm:$0xff] }
 0x1ec   :  { %1383 = vmatpush.msra.mxu1 %v3924_v28  ;;  %1323 = vmatpush.msrb.mxu2 %v3925_v34  ;;  %v3944_v28 = vld [vmem:[#allocation119_spill] sm:$0xff]  ;;  %v3945_v34 = vld [vmem:[#allocation80_spill] sm:$0xff] }
 0x1ed   :  { %1340 = vmatpush.msrb.mxu3 %v3926_v38  ;;  %1367 = vmatpush.msra.mxu0 %v3927_v40  ;;  %v3946_v38 = vld [vmem:[#allocation81_spill] sm:$0xff]  ;;  %v3947_v40 = vld [vmem:[#allocation120_spill] sm:$0xff] }
 0x1ee   :  { %1384 = vmatpush.msra.mxu1 %v3928_v44  ;;  %1295 = vmatmul.f32.vlgmr.msrb.gmra.mxu0 %v3202_v60  ;;  %v3948_v44 = vld [vmem:[#allocation121_spill] sm:$0xff] }
 0x1ef   :  { %1315 = vmatmul.f32.vlgmr.msrb.gmra.mxu1 %v3218_v31  ;;  %1324 = vmatpush.msrb.mxu2 %v3929_v48  ;;  %v3949_v48 = vld [vmem:[#allocation82_spill] sm:$0xff] }
 0x1f0   :  { %1341 = vmatpush.msrb.mxu3 %v3930_v61  ;;  %1368 = vmatpush.msra.mxu0 %v3931_v2  ;;  %v3950_v61 = vld [vmem:[#allocation83_spill] sm:$0xff]  ;;  %v3951_v2 = vld [vmem:[#allocation122_spill] sm:$0xff] }
 0x1f1   :  { %1385 = vmatpush.msra.mxu1 %v3932_v11  ;;  %1325 = vmatpush.msrb.mxu2 %v3933_v1  ;;  %v3952_v11 = vld [vmem:[#allocation123_spill] sm:$0xff]  ;;  %v3953_v1 = vld [vmem:[#allocation85_spill] sm:$0xff] }
 0x1f2   :  { %1342 = vmatpush.msrb.mxu3 %v3934_v35  ;;  %1369 = vmatpush.msra.mxu0 %v3935_v15  ;;  %v3954_v35 = vld [vmem:[#allocation86_spill] sm:$0xff]  ;;  %v3955_v15 = vld [vmem:[#allocation124_spill] sm:$0xff] }
 0x1f3   :  { %1386 = vmatpush.msra.mxu1 %v3936_v18  ;;  %1326 = vmatpush.msrb.mxu2 %v3937_v26  ;;  %v3956_v18 = vld [vmem:[#allocation125_spill] sm:$0xff]  ;;  %v3957_v26 = vld [vmem:[#allocation88_spill] sm:$0xff] }
 0x1f4   :  { %1343 = vmatpush.msrb.mxu3 %v3938_v30  ;;  %1370 = vmatpush.msra.mxu0 %v3939_v12  ;;  %v3958_v30 = vld [vmem:[#allocation89_spill] sm:$0xff]  ;;  %v3959_v12 = vld [vmem:[#allocation127_spill] sm:$0xff] }
 0x1f5   :  { %1387 = vmatpush.msra.mxu1 %v3940_v13  ;;  %1327 = vmatpush.msrb.mxu2 %v3941_v33  ;;  %v3960_v13 = vld [vmem:[#allocation126_spill] sm:$0xff]  ;;  %v3961_v33 = vld [vmem:[#allocation91_spill] sm:$0xff] }
 0x1f6   :  { %1344 = vmatpush.msrb.mxu3 %v3942_v14  ;;  %1371 = vmatpush.msra.mxu0 %v3943_v20  ;;  %v3962_v14 = vld [vmem:[#allocation92_spill] sm:$0xff]  ;;  %v3963_v20 = vld [vmem:[#allocation129_spill] sm:$0xff] }
 0x1f7   :  { %1388 = vmatpush.msra.mxu1 %v3944_v28  ;;  %1328 = vmatpush.msrb.mxu2 %v3945_v34  ;;  %v3964_v28 = vld [vmem:[#allocation128_spill] sm:$0xff]  ;;  %v3965_v34 = vld [vmem:[#allocation94_spill] sm:$0xff] }
 0x1f8   :  { %1345 = vmatpush.msrb.mxu3 %v3946_v38  ;;  %1372 = vmatpush.msra.mxu0 %v3947_v40  ;;  %v3966_v38 = vld [vmem:[#allocation95_spill] sm:$0xff] }
 0x1f9   :  { %1389 = vmatpush.msra.mxu1 %v3948_v44  ;;  %1329 = vmatpush.msrb.mxu2 %v3949_v48  ;;  %v3967_v40 = vld [vmem:[#allocation131_spill] sm:$0xff]  ;;  %v3968_v44 = vld [vmem:[#allocation130_spill] sm:$0xff] }
 0x1fa   :  { %1346 = vmatpush.msrb.mxu3 %v3950_v61  ;;  %1373 = vmatpush.msra.mxu0 %v3951_v2  ;;  %v3969_v48 = vld [vmem:[#allocation99_spill] sm:$0xff]  ;;  %v3970_v61 = vld [vmem:[#allocation100_spill] sm:$0xff] }
 0x1fb   :  { %1390 = vmatpush.msra.mxu1 %v3952_v11  ;;  %1330 = vmatpush.msrb.mxu2 %v3953_v1  ;;  %v3971_v2 = vld [vmem:[#allocation132_spill] sm:$0xff]  ;;  %v3972_v11 = vld [vmem:[#allocation133_spill] sm:$0xff]  ;;  %v3973_v1 = vld [vmem:[#allocation103_spill] sm:$0xff] }
 0x1fc   :  { %1347 = vmatpush.msrb.mxu3 %v3954_v35  ;;  %1374 = vmatpush.msra.mxu0 %v3955_v15  ;;  %v3974_v35 = vld [vmem:[#allocation135_spill] sm:$0xff]  ;;  %v3975_v15 = vld [vmem:[#allocation134_spill] sm:$0xff] }
 0x1fd   :  { %1391 = vmatpush.msra.mxu1 %v3956_v18  ;;  %1331 = vmatpush.msrb.mxu2 %v3957_v26  ;;  %v3976_v18 = vld [vmem:[#allocation136_spill] sm:$0xff]  ;;  %v3977_v26 = vld [vmem:[#allocation106_spill] sm:$0xff] }
 0x1fe   :  { %1348 = vmatpush.msrb.mxu3 %v3958_v30  ;;  %1375 = vmatmul.f32.vlgmr.msra.gmra.mxu0 %v3202_v60  ;;  %v3978_v30 = vld [vmem:[#allocation138_spill] sm:$0xff] }
 0x1ff   :  { %1392 = vmatpush.msra.mxu1 %v3959_v12  ;;  %1439 = vmatpush.msrb.mxu0 %v3960_v13  ;;  %v3979_v12 = vld [vmem:[#allocation137_spill] sm:$0xff]  ;;  %v3980_v13 = vld [vmem:[#allocation139_spill] sm:$0xff] }
 0x200   :  { %1332 = vmatpush.msrb.mxu2 %v3961_v33  ;;  %1349 = vmatpush.msrb.mxu3 %v3962_v14  ;;  %v3981_v33 = vld [vmem:[#allocation110_spill] sm:$0xff]  ;;  %v3982_v14 = vld [vmem:[#allocation141_spill] sm:$0xff] }
 0x201   :  { %1393 = vmatpush.msra.mxu1 %v3963_v20  ;;  %1440 = vmatpush.msrb.mxu0 %v3964_v28  ;;  %v3983_v20 = vld [vmem:[#allocation140_spill] sm:$0xff]  ;;  %v3984_v28 = vld [vmem:[#allocation142_spill] sm:$0xff] }
 0x202   :  { %1333 = vmatpush.msrb.mxu2 %v3965_v34  ;;  %1350 = vmatpush.msrb.mxu3 %v3966_v38  ;;  %v3985_v34 = vld [vmem:[#allocation144_spill] sm:$0xff]  ;;  %v3986_v38 = vld [vmem:[#allocation145_spill] sm:$0xff] }
 0x203   :  { %1394 = vmatpush.msra.mxu1 %v3967_v40  ;;  %1441 = vmatpush.msrb.mxu0 %v3968_v44  ;;  %v3987_v40 = vld [vmem:[#allocation143_spill] sm:$0xff]  ;;  %v3988_v44 = vld [vmem:[#allocation146_spill] sm:$0xff] }
 0x204   :  { %1334 = vmatpush.msrb.mxu2 %v3969_v48  ;;  %1351 = vmatpush.msrb.mxu3 %v3970_v61  ;;  %v3989_v48 = vld [vmem:[#allocation148_spill] sm:$0xff]  ;;  %v3990_v61 = vld [vmem:[#allocation149_spill] sm:$0xff] }
 0x205   :  { %1395 = vmatmul.f32.vlgmr.msra.gmra.mxu1 %v3218_v31  ;;  %1442 = vmatpush.msrb.mxu0 %v3971_v2  ;;  %v3991_v2 = vld [vmem:[#allocation147_spill] sm:$0xff] }
 0x206   :  { %1459 = vmatpush.msrb.mxu1 %v3972_v11  ;;  %1335 = vmatmul.f32.vlgmr.msrb.gmra.mxu2 %v3232_v5  ;;  %v3992_v11 = vld [vmem:[#allocation150_spill] sm:$0xff] }
 0x207   :  { %1352 = vmatpush.msrb.mxu3 %v3973_v1  ;;  %1399 = vmatpush.msra.mxu2 %v3974_v35  ;;  %v3993_v1 = vld [vmem:[#allocation152_spill] sm:$0xff]  ;;  %v3994_v35 = vld [vmem:[#allocation153_spill] sm:$0xff] }
 0x208   :  { %1443 = vmatpush.msrb.mxu0 %v3975_v15  ;;  %1460 = vmatpush.msrb.mxu1 %v3976_v18  ;;  %v3995_v15 = vld [vmem:[#allocation151_spill] sm:$0xff]  ;;  %v3996_v18 = vld [vmem:[#allocation154_spill] sm:$0xff] }
 0x209   :  { %1353 = vmatpush.msrb.mxu3 %v3977_v26  ;;  %1400 = vmatpush.msra.mxu2 %v3978_v30  ;;  %v3997_v26 = vld [vmem:[#allocation156_spill] sm:$0xff]  ;;  %v3998_v30 = vld [vmem:[#allocation157_spill] sm:$0xff] }
 0x20a   :  { %1444 = vmatpush.msrb.mxu0 %v3979_v12  ;;  %1461 = vmatpush.msrb.mxu1 %v3980_v13  ;;  %v3999_v12 = vld [vmem:[#allocation155_spill] sm:$0xff]  ;;  %v4000_v13 = vld [vmem:[#allocation158_spill] sm:$0xff] }
 0x20b   :  { %1354 = vmatpush.msrb.mxu3 %v3981_v33  ;;  %1401 = vmatpush.msra.mxu2 %v3982_v14  ;;  %v4001_v33 = vld [vmem:[#allocation159_spill] sm:$0xff]  ;;  %v4002_v14 = vld [vmem:[#allocation160_spill] sm:$0xff] }
 0x20c   :  { %1445 = vmatpush.msrb.mxu0 %v3983_v20  ;;  %1462 = vmatpush.msrb.mxu1 %v3984_v28  ;;  %v4003_v20 = vld [vmem:[#allocation161_spill] sm:$0xff]  ;;  %v4004_v28 = vld [vmem:[#allocation162_spill] sm:$0xff] }
 0x20d   :  { %1355 = vmatmul.f32.vlgmr.msrb.gmra.mxu3 %v3238_v8  ;;  %1402 = vmatpush.msra.mxu2 %v3985_v34  ;;  %v4005_v34 = vld [vmem:[#allocation163_spill] sm:$0xff] }
 0x20e   :  { %1419 = vmatpush.msra.mxu3 %v3986_v38  ;;  %1446 = vmatpush.msrb.mxu0 %v3987_v40  ;;  %v4006_v38 = vld [vmem:[#allocation164_spill] sm:$0xff]  ;;  %v4007_v40 = vld [vmem:[#allocation165_spill] sm:$0xff] }
 0x20f   :  { %1463 = vmatpush.msrb.mxu1 %v3988_v44  ;;  %1403 = vmatpush.msra.mxu2 %v3989_v48  ;;  %v4008_v44 = vld [vmem:[#allocation166_spill] sm:$0xff]  ;;  %v4009_v48 = vld [vmem:[#allocation167_spill] sm:$0xff] }
 0x210   :  { %1420 = vmatpush.msra.mxu3 %v3990_v61  ;;  %1447 = vmatpush.msrb.mxu0 %v3991_v2  ;;  %v4010_v61 = vld [vmem:[#allocation168_spill] sm:$0xff]  ;;  %v4011_v2 = vld [vmem:[#allocation169_spill] sm:$0xff] }
 0x211   :  { %1464 = vmatpush.msrb.mxu1 %v3992_v11  ;;  %1404 = vmatpush.msra.mxu2 %v3993_v1  ;;  %v4012_v11 = vld [vmem:[#allocation170_spill] sm:$0xff]  ;;  %v4013_v1 = vld [vmem:[#allocation171_spill] sm:$0xff] }
 0x212   :  { %1421 = vmatpush.msra.mxu3 %v3994_v35  ;;  %1448 = vmatpush.msrb.mxu0 %v3995_v15  ;;  %v4014_v35 = vld [vmem:[#allocation172_spill] sm:$0xff]  ;;  %v4015_v15 = vld [vmem:[#allocation173_spill] sm:$0xff] }
 0x213   :  { %1465 = vmatpush.msrb.mxu1 %v3996_v18  ;;  %1405 = vmatpush.msra.mxu2 %v3997_v26  ;;  %v4016_v18 = vld [vmem:[#allocation174_spill] sm:$0xff]  ;;  %v4017_v26 = vld [vmem:[#allocation175_spill] sm:$0xff] }
 0x214   :  { %1422 = vmatpush.msra.mxu3 %v3998_v30  ;;  %1449 = vmatpush.msrb.mxu0 %v3999_v12  ;;  %v4018_v30 = vld [vmem:[#allocation176_spill] sm:$0xff]  ;;  %v4019_v12 = vld [vmem:[#allocation177_spill] sm:$0xff] }
 0x215   :  { %1466 = vmatpush.msrb.mxu1 %v4000_v13  ;;  %1406 = vmatpush.msra.mxu2 %v4001_v33 }
 0x216   :  { %1423 = vmatpush.msra.mxu3 %v4002_v14  ;;  %1450 = vmatpush.msrb.mxu0 %v4003_v20 }
 0x217   :  { %1467 = vmatpush.msrb.mxu1 %v4004_v28  ;;  %1407 = vmatpush.msra.mxu2 %v4005_v34 }
 0x218   :  { %1424 = vmatpush.msra.mxu3 %v4006_v38  ;;  %1451 = vmatpush.msrb.mxu0 %v4007_v40 }
 0x219   :  { %1468 = vmatpush.msrb.mxu1 %v4008_v44  ;;  %1408 = vmatpush.msra.mxu2 %v4009_v48 }
 0x21a   :  { %1425 = vmatpush.msra.mxu3 %v4010_v61  ;;  %1452 = vmatpush.msrb.mxu0 %v4011_v2 }
 0x21b   :  { %1469 = vmatpush.msrb.mxu1 %v4012_v11  ;;  %1409 = vmatpush.msra.mxu2 %v2962_v29  ;;  %v4020_v29 = vld [vmem:[#allocation178_spill] sm:$0xff] }
 0x21c   :  { %1426 = vmatpush.msra.mxu3 %v4013_v1  ;;  %1453 = vmatpush.msrb.mxu0 %v4014_v35 }
 0x21d   :  { %1470 = vmatpush.msrb.mxu1 %v4015_v15  ;;  %1410 = vmatpush.msra.mxu2 %v2974_v46  ;;  %v4021_v46 = vld [vmem:[#allocation179_spill] sm:$0xff] }
 0x21e   :  { %1427 = vmatpush.msra.mxu3 %v4016_v18  ;;  %1454 = vmatpush.msrb.mxu0 %v4017_v26 }
 0x21f   :  { %1471 = vmatpush.msrb.mxu1 %v4018_v30  ;;  %1411 = vmatpush.msra.mxu2 %v2986_v62  ;;  %v956_v62 = vpop.f32.mrf.mxu3 }
 0x220   :  { %1428 = vmatpush.msra.mxu3 %v4019_v12  ;;  %1455 = vmatmul.f32.vlgmr.msrb.gmra.mxu0 %v3202_v60 }
 0x221   :  { %1472 = vmatpush.msrb.mxu1 %v2992_v0  ;;  %1412 = vmatpush.msra.mxu2 %v2996_v50  ;;  %v916_v0 = vpop.f32.mrf.mxu1  ;;  %v936_v50 = vpop.f32.mrf.mxu2 }
 0x222   :  { %1429 = vmatpush.msra.mxu3 %v3000_v25  ;;  %v4022_v25 = vld [vmem:[#allocation180_spill] sm:$0xff] }
 0x223   :  { %1473 = vmatpush.msrb.mxu1 %v4020_v29  ;;  %1413 = vmatpush.msra.mxu2 %v3006_v23  ;;  %v4023_v23 = vld [vmem:[#allocation181_spill] sm:$0xff] }
 0x224   :  { %1430 = vmatpush.msra.mxu3 %v3010_v42  ;;  %v896_v42 = vpop.f32.mrf.mxu0 }
 0x225   :  { %1474 = vmatpush.msrb.mxu1 %v3012_v4  ;;  %1414 = vmatpush.msra.mxu2 %v3016_v24  ;;  %v4024_v24 = vld [vmem:[#allocation182_spill] sm:$0xff]  ;;  %v4025_v4 = vld [vmem:[#allocation183_spill] sm:$0xff] }
 0x226   :  { %1431 = vmatpush.msra.mxu3 %v4021_v46  ;;  %1475 = vmatmul.f32.vlgmr.msrb.gmra.mxu1 %v3218_v31 }
 0x227   :  { %1415 = vmatmul.f32.vlgmr.msra.gmra.mxu2 %v3232_v5 }
 0x228   :  { %1479 = vmatpush.msrb.mxu2 %v3030_v37  ;;  %1432 = vmatpush.msra.mxu3 %v3026_v51  ;;  %v4026_v37 = vld [vmem:[#allocation184_spill] sm:$0xff] }
 0x22a   :  { %1480 = vmatpush.msrb.mxu2 %v3038_v54  ;;  %1433 = vmatpush.msra.mxu3 %v4022_v25  ;;  %v1036_v54 = vpop.f32.mrf.mxu3 }
 0x22c   :  { %1481 = vmatpush.msrb.mxu2 %v3046_v22  ;;  %1434 = vmatpush.msra.mxu3 %v4023_v23  ;;  %v976_v51 = vpop.f32.mrf.mxu0 }
 0x22d   :  { %1435 = vmatmul.f32.vlgmr.msra.gmra.mxu3 %v3238_v8 }
 0x22e   :  { %1482 = vmatpush.msrb.mxu2 %v4024_v24  ;;  %1499 = vmatpush.msrb.mxu3 %v3054_v57 }
 0x230   :  { %1483 = vmatpush.msrb.mxu2 %v4025_v4  ;;  %1500 = vmatpush.msrb.mxu3 %v3061_v52  ;;  %v1016_v52 = vpop.f32.mrf.mxu2 }
 0x232   :  { %1484 = vmatpush.msrb.mxu2 %v4026_v37  ;;  %1501 = vmatpush.msrb.mxu3 %v3068_v7  ;;  %v996_v7 = vpop.f32.mrf.mxu1 }
 0x234   :  { %1485 = vmatpush.msrb.mxu2 %v3073_v55  ;;  %1502 = vmatpush.msrb.mxu3 %v3075_v53  ;;  %v1056_v53 = vpop.f32.mrf.mxu0 }
 0x236   :  { %1486 = vmatpush.msrb.mxu2 %v3080_v56  ;;  %1503 = vmatpush.msrb.mxu3 %v3082_v59  ;;  %v1116_v59 = vpop.f32.mrf.mxu3 }
 0x238   :  { %1487 = vmatpush.msrb.mxu2 %v3087_v6  ;;  %1504 = vmatpush.msrb.mxu3 %v3089_v3  ;;  %v1096_v57 = vpop.f32.mrf.mxu2 }
 0x23a   :  { %1488 = vmatpush.msrb.mxu2 %v3095_v16  ;;  %1505 = vmatpush.msrb.mxu3 %v3097_v9  ;;  %v1076_v22 = vpop.f32.mrf.mxu1 }
 0x23c   :  { %1489 = vmatpush.msrb.mxu2 %v3103_v19  ;;  %1506 = vmatpush.msrb.mxu3 %v3105_v10  ;;  %v1136_v55 = vpop.f32.mrf.mxu0 }
 0x23e   :  { %1490 = vmatpush.msrb.mxu2 %v3111_v17  ;;  %1507 = vmatpush.msrb.mxu3 %v3113_v27 }
 0x240   :  { %1491 = vmatpush.msrb.mxu2 %v3119_v21  ;;  %1508 = vmatpush.msrb.mxu3 %v3121_v36 }
 0x242   :  { %1492 = vmatpush.msrb.mxu2 %v3127_v32  ;;  %1509 = vmatpush.msrb.mxu3 %v3129_v41  ;;  %v1156_v3 = vpop.f32.mrf.mxu1  ;;  %v997_v32 = vadd.f32 %v996_v7, %v976_v51  ;;  %v917_v41 = vadd.f32 %v916_v0, %v896_v42 }
 0x243   :  { %v1157_v29 = vadd.f32 %v1156_v3, %v1136_v55 }
 0x244   :  { %1493 = vmatpush.msrb.mxu2 %v3135_v39  ;;  %1510 = vmatpush.msrb.mxu3 %v3137_v45  ;;  %v1176_v56 = vpop.f32.mrf.mxu2  ;;  %v1077_v45 = vadd.f32 %v1076_v22, %v1056_v53  ;;  %v937_v13 = vadd.f32 %v936_v50, %v917_v41 }
 0x245   :  { %v1177_v23 = vadd.f32 %v1176_v56, %v1157_v29 }
 0x246   :  { %1494 = vmatpush.msrb.mxu2 %v3143_v43  ;;  %1511 = vmatpush.msrb.mxu3 %v3145_v49  ;;  %v1017_v43 = vadd.f32 %v1016_v52, %v997_v32  ;;  %v1097_v31 = vadd.f32 %v1096_v57, %v1077_v45  ;;  %v3410_v44 = vadd.f32 %v956_v62, %v937_v13 }
 0x247   :  { %1495 = vmatmul.f32.vlgmr.msrb.gmra.mxu2 %v3232_v5 }
 0x248   :  { %1512 = vmatpush.msrb.mxu3 %v3151_v47  ;;  %v3404_v60 = vadd.f32 %v1036_v54, %v1017_v43  ;;  %v3406_v14 = vadd.f32 %v1116_v59, %v1097_v31  ;;  %v1519_v1 = vmul.f32 %v3410_v44, %v3410_v44 }
 0x24a   :  { %1513 = vmatpush.msrb.mxu3 %v3157_v58  ;;  %v1520_v38 = vmul.f32 %v3404_v60, %v3404_v60  ;;  %v1521_v48 = vmul.f32 %v3406_v14, %v3406_v14 }
 0x24b   :  { %v1196_v6 = vpop.f32.mrf.mxu3 }
 0x24c   :  { %1514 = vmatpush.msrb.mxu3 %v3162_v63  ;;  %v3416_v37 = vadd.f32 %v1196_v6, %v1177_v23 }
 0x24d   :  { %1515 = vmatmul.f32.vlgmr.msrb.gmra.mxu3 %v3238_v8 }
 0x24e   :  { %v1522_v51 = vmul.f32 %v3416_v37, %v3416_v37 }
 0x257   :  { %v1216_v9 = vpop.f32.mrf.mxu0 }
 0x25e   :  { %v1236_v16 = vpop.f32.mrf.mxu1 }
 0x25f   :  { %v1237_v47 = vadd.f32 %v1236_v16, %v1216_v9 }
 0x26a   :  { %v1256_v19 = vpop.f32.mrf.mxu2 }
 0x26b   :  { %v1296_v27 = vpop.f32.mrf.mxu0  ;;  %v1257_v34 = vadd.f32 %v1256_v19, %v1237_v47 }
 0x26c   :  { %v1316_v17 = vpop.f32.mrf.mxu1 }
 0x26d   :  { %v1276_v10 = vpop.f32.mrf.mxu3  ;;  %v1317_v49 = vadd.f32 %v1316_v17, %v1296_v27 }
 0x26e   :  { %v1277_v2 = vadd.f32 %v1276_v10, %v1257_v34 }
 0x270   :  { %v1523_v15 = vsub.f32 %v1277_v2, %v1519_v1 }
 0x272   :  { %v1527_v30 = vmax.f32 %v1523_v15, 0.0 }
 0x274   :  { %v1532_v46 = vadd.f32 1e-05, %v1527_v30 }
 0x276   :  { %vm1542_vm11 = vweird.f32 %v1532_v46 }
 0x27b   :  { %v1376_v58 = vpop.f32.mrf.mxu0 }
 0x282   :  { %v1396_v39 = vpop.f32.mrf.mxu1 }
 0x283   :  { %v1397_v5 = vadd.f32 %v1396_v39, %v1376_v58 }
 0x289   :  { %v1336_v21 = vpop.f32.mrf.mxu2 }
 0x28a   :  { %v1337_v8 = vadd.f32 %v1336_v21, %v1317_v49 }
 0x290   :  { %v1356_v36 = vpop.f32.mrf.mxu3 }
 0x291   :  { %v1357_v20 = vadd.f32 %v1356_v36, %v1337_v8 }
 0x293   :  { %v1524_v61 = vsub.f32 %v1357_v20, %v1520_v38 }
 0x295   :  { %v1528_v35 = vmax.f32 %v1524_v61, 0.0 }
 0x297   :  { %v1533_v26 = vadd.f32 1e-05, %v1528_v35 }
 0x299   :  { %2034 = vrsqrt.f32 %v1533_v26  ;;  %vm1552_vm2 = vweird.f32 %v1533_v26 }
 0x29d   :  { %v1456_v24 = vpop.f32.mrf.mxu0 }
 0x29f   :  { %v2035_v42 = vpop.eup %2034 }
 0x2a0   :  { %v1547_v54 = vmul.f32 %v2035_v42, %v1533_v26  ;;  %vm1553_vm1 = vweird.f32 %v2035_v42 }
 0x2a1   :  { %vm1554_vm4 = vmor %vm1552_vm2, %vm1553_vm1 }
 0x2a2   :  { %v1548_v3 = vmul.f32 %v2035_v42, %v1547_v54  ;;  %v1621_v54 = vld [vmem:[%s3519_s3 + $0x18] sm:$0xff] }
 0x2a3   :  { %v1476_v25 = vpop.f32.mrf.mxu1 }
 0x2a4   :  { %v1477_v0 = vadd.f32 %v1476_v25, %v1456_v24  ;;  %v1549_v16 = vmul.f32 0.5, %v1548_v3 }
 0x2a6   :  { %v1550_v10 = vsub.f32 1.5, %v1549_v16 }
 0x2a8   :  { %v1551_v32 = vmul.f32 %v2035_v42, %v1550_v10 }
 0x2aa   :  { %v1416_v63 = vpop.f32.mrf.mxu2  ;;  %v1555_v49 = vsel %vm1554_vm4, %v2035_v42, %v1551_v32  ;;  %v1619_v42 = vld [vmem:[%s3519_s3 + $0x8] sm:$0xff]  ;;  %v4028_v32 = vld [vmem:[#allocation19_spill] sm:$0xff] }
 0x2ab   :  { %v1417_v28 = vadd.f32 %v1416_v63, %v1397_v5  ;;  %v1580_v5 = vrot.slane %v1555_v49, 6 }
 0x2b0   :  { %v1436_v33 = vpop.f32.mrf.mxu3 }
 0x2b1   :  { %v1437_v40 = vadd.f32 %v1436_v33, %v1417_v28  ;;  %v1531_v28 = vld [vmem:[%s3521_s5] sm:$0xff] }
 0x2b3   :  { %v1525_v11 = vsub.f32 %v1437_v40, %v1521_v48 }
 0x2b5   :  { %v1529_v18 = vmax.f32 %v1525_v11, 0.0 }
 0x2b7   :  { %v1534_v12 = vadd.f32 1e-05, %v1529_v18 }
 0x2b9   :  { %2036 = vrsqrt.f32 %v1534_v12  ;;  %vm1562_vm5 = vweird.f32 %v1534_v12 }
 0x2ba   :  { %2038 = vrsqrt.f32 %v1532_v46 }
 0x2bf   :  { %v2037_v7 = vpop.eup %2036 }
 0x2c0   :  { %v2039_v53 = vpop.eup %2038  ;;  %v1557_v57 = vmul.f32 %v2037_v7, %v1534_v12  ;;  %vm1563_vm3 = vweird.f32 %v2037_v7 }
 0x2c1   :  { %v1537_v55 = vmul.f32 %v2039_v53, %v1532_v46  ;;  %vm1543_vm7 = vweird.f32 %v2039_v53  ;;  %vm1564_vm8 = vmor %vm1562_vm5, %vm1563_vm3  ;;  %v1591_v46 = vld [vmem:[%s3522_s6] sm:$0xff] }
 0x2c2   :  { %v1558_v6 = vmul.f32 %v2037_v7, %v1557_v57  ;;  %vm1544_vm14 = vmor %vm1542_vm11, %vm1543_vm7 }
 0x2c3   :  { %v1538_v9 = vmul.f32 %v2039_v53, %v1537_v55 }
 0x2c4   :  { %v1559_v19 = vmul.f32 0.5, %v1558_v6 }
 0x2c5   :  { %v1539_v27 = vmul.f32 0.5, %v1538_v9 }
 0x2c6   :  { %v1560_v21 = vsub.f32 1.5, %v1559_v19 }
 0x2c7   :  { %v1540_v39 = vsub.f32 1.5, %v1539_v27 }
 0x2c8   :  { %v1561_v45 = vmul.f32 %v2037_v7, %v1560_v21  ;;  %v4027_v21 = vld [vmem:[#allocation15_spill] sm:$0xff] }
 0x2c9   :  { %v1541_v58 = vmul.f32 %v2039_v53, %v1540_v39 }
 0x2ca   :  { %v1496_v4 = vpop.f32.mrf.mxu2  ;;  %v1565_v63 = vsel %vm1564_vm8, %v2037_v7, %v1561_v45 }
 0x2cb   :  { %v1497_v50 = vadd.f32 %v1496_v4, %v1477_v0  ;;  %v1581_v13 = vrot.slane %v1565_v63, 4  ;;  %v1545_v20 = vsel %vm1544_vm14, %v2039_v53, %v1541_v58 }
 0x2cc   :  { %v1584_v34 = vsel %vm1583_vm12, %v1545_v20, %v1580_v5  ;;  %v4029_v5 = vld [vmem:[#allocation23_spill] sm:$0xff]  ;;  %v4031_v20 = vld [vmem:[#allocation14_spill] sm:$0xff] }
 0x2d0   :  { %v1516_v62 = vpop.f32.mrf.mxu3 }
 0x2d1   :  { %v1517_v52 = vadd.f32 %v1516_v62, %v1497_v50 }
 0x2d3   :  { %v1526_v22 = vsub.f32 %v1517_v52, %v1522_v51  ;;  %v1620_v52 = vld [vmem:[%s3519_s3 + $0x10] sm:$0xff] }
 0x2d5   :  { %v1530_v59 = vmax.f32 %v1526_v22, 0.0 }
 0x2d7   :  { %v1535_v56 = vadd.f32 1e-05, %v1530_v59 }
 0x2d9   :  { %2040 = vrsqrt.f32 %v1535_v56  ;;  %vm1572_vm9 = vweird.f32 %v1535_v56 }
 0x2df   :  { %v2041_v17 = vpop.eup %2040 }
 0x2e0   :  { %v1567_v36 = vmul.f32 %v2041_v17, %v1535_v56  ;;  %vm1573_vm6 = vweird.f32 %v2041_v17 }
 0x2e1   :  { %vm1574_vm10 = vmor %vm1572_vm9, %vm1573_vm6 }
 0x2e2   :  { %v1568_v41 = vmul.f32 %v2041_v17, %v1567_v36 }
 0x2e4   :  { %v1569_v43 = vmul.f32 0.5, %v1568_v41 }
 0x2e6   :  { %v1570_v47 = vsub.f32 1.5, %v1569_v43 }
 0x2e8   :  { %v1571_v31 = vmul.f32 %v2041_v17, %v1570_v47 }
 0x2ea   :  { %v1575_v8 = vsel %vm1574_vm10, %v2041_v17, %v1571_v31 }
 0x2eb   :  { %v1582_v33 = vrot.slane %v1575_v8, 2 }
 0x2ed   :  { %v1586_v38 = vsel %vm1585_vm13, %v1581_v13, %v1582_v33  ;;  %v4030_v13 = vld [vmem:[#allocation27_spill] sm:$0xff] }
 0x2ee   :  { %v1588_v40 = vsel %vm1587_vm15, %v1584_v34, %v1586_v38  ;;  %v4032_v34 = vld [vmem:[#allocation18_spill] sm:$0xff] }
 0x2ef   :  { %v1590_v48 = vmul.f32 %v1588_v40, %v1531_v28 }
 0x2f1   :  { %1593 = vst [vmem:[#allocation1] ss:$4 sm:$0xff] %v1590_v48 }
 0x2f8   :  { %v1594_v61 = vld.sshfl [vmem:[#allocation1] sm:$0xff pattern:$0x73625140]  ;;  %v1595_v2 = vld.sshfl [vmem:[#allocation1 + $0x8] sm:$0xff pattern:$0x73625140] }
 0x2f9   :  { %v1596_v11 = vld.sshfl [vmem:[#allocation1 + $0x10] sm:$0xff pattern:$0x73625140]  ;;  %v1597_v1 = vld.sshfl [vmem:[#allocation1 + $0x18] sm:$0xff pattern:$0x73625140]  ;;  %v1603_v35 = vmul.f32 %v1595_v2, %v3404_v60  ;;  %v1602_v26 = vmul.f32 %v1594_v61, %v3410_v44 }
 0x2fa   :  { %v1604_v15 = vmul.f32 %v1596_v11, %v3406_v14  ;;  %v1605_v18 = vmul.f32 %v1597_v1, %v3416_v37  ;;  %1622 = vst [vmem:[#allocation1] ss:$4 sm:$0xff] %v1590_v48  ;;  %v1618_v14 = vld [vmem:[%s3519_s3] sm:$0xff]  ;;  %s2161_s3 = smov [#allocation8]  }
 0x2fb   :  { %v1610_v30 = vrot.slane %v1603_v35, 6  ;;  %s1962_s28 = sshll.u32 %s2161_s3, 4  ;;  %s1963_s28 = int_to_ptr.vmem [resolvable:$true] %s1962_s28 }
 0x2fc   :  { %v1611_v12 = vrot.slane %v1604_v15, 4  ;;  %v1612_v29 = vrot.slane %v1605_v18, 2 }
 0x2fd   :  { %v1613_v25 = vsel %vm1583_vm12, %v1602_v26, %v1610_v30 }
 0x2fe   :  { %v1614_v23 = vsel %vm1585_vm13, %v1611_v12, %v1612_v29  ;;  %v4033_v29 = vld [vmem:[#allocation22_spill] sm:$0xff] }
 0x2ff   :  { %v1615_v60 = vsel %vm1587_vm15, %v1613_v25, %v1614_v23  ;;  %v4034_v25 = vld [vmem:[#allocation26_spill] sm:$0xff] }
 0x300   :  { %v1617_v24 = vsub.f32 %v1591_v46, %v1615_v60  ;;  %v4035_v60 = vld [vmem:[#allocation13_spill] sm:$0xff] }
 0x301   :  { %v1623_v44 = vld.sshfl [vmem:[#allocation1] sm:$0xff pattern:$0x73625140]  ;;  %v1624_v4 = vld.sshfl [vmem:[#allocation1 + $0x8] sm:$0xff pattern:$0x73625140] }
 0x302   :  { %1986 = vmatpush.msk.msra.mxu0 %vm1583_vm12, %v1623_v44  ;;  %1991 = vmatpush.msk.msra.mxu1 %vm1583_vm12, %v1624_v4  ;;  %v1625_v37 = vld.sshfl [vmem:[#allocation1 + $0x10] sm:$0xff pattern:$0x73625140]  ;;  %v1626_v0 = vld.sshfl [vmem:[#allocation1 + $0x18] sm:$0xff pattern:$0x73625140] }
 0x303   :  { %1996 = vmatpush.msk.msra.mxu2 %vm1583_vm12, %v1625_v37  ;;  %1628 = vst [vmem:[#allocation1] ss:$4 sm:$0xff] %v1617_v24  ;;  %2001 = vmatpush.msk.msra.mxu3 %vm1583_vm12, %v1626_v0 }
 0x304   :  { %1987 = vmatmul.msk.f32.vlgmr.msra.gmra.mxu0 %vm1633_vm0, %v1618_v14  ;;  %1992 = vmatmul.msk.f32.vlgmr.msra.gmra.mxu1 %vm1633_vm0, %v1618_v14 }
 0x305   :  { %1997 = vmatmul.msk.f32.vlgmr.msra.gmra.mxu2 %vm1633_vm0, %v1618_v14  ;;  %2002 = vmatmul.msk.f32.vlgmr.msra.gmra.mxu3 %vm1633_vm0, %v1618_v14 }
 0x30a   :  { %v1629_v50 = vld.sshfl [vmem:[#allocation1] sm:$0xff pattern:$0x73625140]  ;;  %v1630_v62 = vld.sshfl [vmem:[#allocation1 + $0x8] sm:$0xff pattern:$0x73625140] }
 0x30b   :  { %2006 = vmatpush.msk.msrb.mxu0 %vm1583_vm12, %v1629_v50  ;;  %2011 = vmatpush.msk.msrb.mxu1 %vm1583_vm12, %v1630_v62  ;;  %v1631_v7 = vld.sshfl [vmem:[#allocation1 + $0x10] sm:$0xff pattern:$0x73625140]  ;;  %v1632_v51 = vld.sshfl [vmem:[#allocation1 + $0x18] sm:$0xff pattern:$0x73625140] }
 0x30c   :  { %2016 = vmatpush.msk.msrb.mxu2 %vm1583_vm12, %v1631_v7  ;;  %2021 = vmatpush.msk.msrb.mxu3 %vm1583_vm12, %v1632_v51 }
 0x30d   :  { %1988 = vmatmul.msk.f32.gmra.mxu0 %vm1633_vm0, %v1619_v42  ;;  %1993 = vmatmul.msk.f32.gmra.mxu1 %vm1633_vm0, %v1619_v42 }
 0x30e   :  { %1998 = vmatmul.msk.f32.gmra.mxu2 %vm1633_vm0, %v1619_v42  ;;  %2003 = vmatmul.msk.f32.gmra.mxu3 %vm1633_vm0, %v1619_v42 }
 0x315   :  { %1989 = vmatmul.msk.f32.gmra.mxu0 %vm1633_vm0, %v1620_v52  ;;  %1994 = vmatmul.msk.f32.gmra.mxu1 %vm1633_vm0, %v1620_v52 }
 0x316   :  { %1999 = vmatmul.msk.f32.gmra.mxu2 %vm1633_vm0, %v1620_v52  ;;  %2004 = vmatmul.msk.f32.gmra.mxu3 %vm1633_vm0, %v1620_v52 }
 0x31d   :  { %1990 = vmatmul.msk.f32.gmra.mxu0 %vm1633_vm0, %v1621_v54  ;;  %1995 = vmatmul.msk.f32.gmra.mxu1 %vm1633_vm0, %v1621_v54 }
 0x31e   :  { %2000 = vmatmul.msk.f32.gmra.mxu2 %vm1633_vm0, %v1621_v54  ;;  %2005 = vmatmul.msk.f32.gmra.mxu3 %vm1633_vm0, %v1621_v54 }
 0x325   :  { %2007 = vmatmul.msk.f32.vlgmr.msrb.gmra.mxu0 %vm1633_vm0, %v1618_v14  ;;  %2012 = vmatmul.msk.f32.vlgmr.msrb.gmra.mxu1 %vm1633_vm0, %v1618_v14 }
 0x326   :  { %2017 = vmatmul.msk.f32.vlgmr.msrb.gmra.mxu2 %vm1633_vm0, %v1618_v14  ;;  %2022 = vmatmul.msk.f32.vlgmr.msrb.gmra.mxu3 %vm1633_vm0, %v1618_v14  ;;  %v4036_v14 = vld [vmem:[#allocation17_spill] sm:$0xff] }
 0x32d   :  { %2008 = vmatmul.msk.f32.gmra.mxu0 %vm1633_vm0, %v1619_v42  ;;  %2013 = vmatmul.msk.f32.gmra.mxu1 %vm1633_vm0, %v1619_v42 }
 0x32e   :  { %2018 = vmatmul.msk.f32.gmra.mxu2 %vm1633_vm0, %v1619_v42  ;;  %2023 = vmatmul.msk.f32.gmra.mxu3 %vm1633_vm0, %v1619_v42 }
 0x335   :  { %2009 = vmatmul.msk.f32.gmra.mxu0 %vm1633_vm0, %v1620_v52  ;;  %2014 = vmatmul.msk.f32.gmra.mxu1 %vm1633_vm0, %v1620_v52 }
 0x336   :  { %2019 = vmatmul.msk.f32.gmra.mxu2 %vm1633_vm0, %v1620_v52  ;;  %2024 = vmatmul.msk.f32.gmra.mxu3 %vm1633_vm0, %v1620_v52 }
 0x33d   :  { %2010 = vmatmul.msk.f32.gmra.mxu0 %vm1633_vm0, %v1621_v54  ;;  %2015 = vmatmul.msk.f32.gmra.mxu1 %vm1633_vm0, %v1621_v54 }
 0x33e   :  { %2020 = vmatmul.msk.f32.gmra.mxu2 %vm1633_vm0, %v1621_v54  ;;  %2025 = vmatmul.msk.f32.gmra.mxu3 %vm1633_vm0, %v1621_v54 }
 0x381   :  { %v1679_v22 = vpop.f32.mrf.mxu0  ;;  %v1708_v53 = vpop.f32.mrf.mxu1 }
 0x382   :  { %v1894_v36 = vmul.f32 %v1679_v22, %v4027_v21  ;;  %v1895_v41 = vmul.f32 %v1708_v53, %v4028_v32 }
 0x388   :  { %v1737_v57 = vpop.f32.mrf.mxu2  ;;  %v1766_v59 = vpop.f32.mrf.mxu3 }
 0x389   :  { %v1896_v8 = vmul.f32 %v1737_v57, %v4029_v5  ;;  %v1897_v33 = vmul.f32 %v1766_v59, %v4030_v13  ;;  %v4037_v57 = vld [vmem:[#allocation21_spill] sm:$0xff] }
 0x38a   :  { %v1682_v3 = vpop.f32.mrf.mxu0  ;;  %v1711_v55 = vpop.f32.mrf.mxu1 }
 0x38b   :  { %v1898_v28 = vmul.f32 %v1682_v3, %v4031_v20  ;;  %v1899_v38 = vmul.f32 %v1711_v55, %v4032_v34  ;;  %v4038_v3 = vld [vmem:[#allocation25_spill] sm:$0xff] }
 0x391   :  { %v1740_v56 = vpop.f32.mrf.mxu2  ;;  %v1769_v6 = vpop.f32.mrf.mxu3 }
 0x392   :  { %v1685_v16 = vpop.f32.mrf.mxu0  ;;  %v1714_v9 = vpop.f32.mrf.mxu1  ;;  %v1900_v46 = vmul.f32 %v1740_v56, %v4033_v29  ;;  %v1901_v23 = vmul.f32 %v1769_v6, %v4034_v25  ;;  %v4039_v56 = vld [vmem:[#allocation12_spill] sm:$0xff] }
 0x393   :  { %v1902_v24 = vmul.f32 %v1685_v16, %v4035_v60  ;;  %v1903_v44 = vmul.f32 %v1714_v9, %v4036_v14  ;;  %v4040_v16 = vld [vmem:[#allocation16_spill] sm:$0xff] }
 0x399   :  { %v1743_v19 = vpop.f32.mrf.mxu2  ;;  %v1772_v10 = vpop.f32.mrf.mxu3 }
 0x39a   :  { %v1688_v17 = vpop.f32.mrf.mxu0  ;;  %v1717_v27 = vpop.f32.mrf.mxu1  ;;  %v1904_v59 = vmul.f32 %v1743_v19, %v4037_v57  ;;  %v1905_v55 = vmul.f32 %v1772_v10, %v4038_v3  ;;  %v4041_v10 = vld [vmem:[#allocation20_spill] sm:$0xff] }
 0x39b   :  { %v1906_v6 = vmul.f32 %v1688_v17, %v4039_v56  ;;  %v1907_v9 = vmul.f32 %v1717_v27, %v4040_v16 }
 0x3a1   :  { %v3490_v39 = vpop.f32.mrf.mxu2  ;;  %v3492_v45 = vpop.f32.mrf.mxu3 }
 0x3a2   :  { %v1795_v43 = vpop.f32.mrf.mxu0  ;;  %v1824_v49 = vpop.f32.mrf.mxu1  ;;  %v1908_v17 = vmul.f32 %v3490_v39, %v4041_v10 }
 0x3a3   :  { %v1910_v47 = vadd.f32 %v1894_v36, %v1795_v43  ;;  %v1911_v58 = vadd.f32 %v1895_v41, %v1824_v49 }
 0x3a5   :  { %v1926_v63 = vmax.f32 %v1910_v47, 0.0  ;;  %v1927_v31 = vmax.f32 %v1911_v58, 0.0 }
 0x3a7   :  { %1942 = vst [vmem:[#allocation8] sm:$0xff] %v1926_v63 }
 0x3a8   :  { %1943 = vst [vmem:[#allocation8 + $0x8] sm:$0xff] %v1927_v31 }
 0x3a9   :  { %v1853_v40 = vpop.f32.mrf.mxu2  ;;  %v1882_v48 = vpop.f32.mrf.mxu3 }
 0x3aa   :  { %v1912_v61 = vadd.f32 %v1896_v8, %v1853_v40  ;;  %v1913_v2 = vadd.f32 %v1897_v33, %v1882_v48  ;;  %v1798_v11 = vpop.f32.mrf.mxu0  ;;  %v1827_v1 = vpop.f32.mrf.mxu1  ;;  %v4042_v8 = vld [vmem:[#allocation24_spill] sm:$0xff] }
 0x3ab   :  { %v1914_v35 = vadd.f32 %v1898_v28, %v1798_v11  ;;  %v1915_v15 = vadd.f32 %v1899_v38, %v1827_v1  ;;  %v1909_v27 = vmul.f32 %v3492_v45, %v4042_v8 }
 0x3ac   :  { %v1928_v18 = vmax.f32 %v1912_v61, 0.0  ;;  %v1929_v26 = vmax.f32 %v1913_v2, 0.0 }
 0x3ad   :  { %v1930_v30 = vmax.f32 %v1914_v35, 0.0  ;;  %v1931_v12 = vmax.f32 %v1915_v15, 0.0 }
 0x3ae   :  { %1944 = vst [vmem:[#allocation8 + $0x10] sm:$0xff] %v1928_v18 }
 0x3af   :  { %1945 = vst [vmem:[#allocation8 + $0x18] sm:$0xff] %v1929_v26 }
 0x3b0   :  { %1946 = vst [vmem:[#allocation8 + $0x20] sm:$0xff] %v1930_v30 }
 0x3b1   :  { %1947 = vst [vmem:[#allocation8 + $0x28] sm:$0xff] %v1931_v12  ;;  %v1856_v4 = vpop.f32.mrf.mxu2  ;;  %v1885_v37 = vpop.f32.mrf.mxu3 }
 0x3b2   :  { %v1916_v0 = vadd.f32 %v1900_v46, %v1856_v4  ;;  %v1917_v42 = vadd.f32 %v1901_v23, %v1885_v37  ;;  %v1801_v50 = vpop.f32.mrf.mxu0  ;;  %v1830_v62 = vpop.f32.mrf.mxu1 }
 0x3b3   :  { %v1918_v7 = vadd.f32 %v1902_v24, %v1801_v50  ;;  %v1919_v51 = vadd.f32 %v1903_v44, %v1830_v62 }
 0x3b4   :  { %v1932_v52 = vmax.f32 %v1916_v0, 0.0  ;;  %v1933_v54 = vmax.f32 %v1917_v42, 0.0 }
 0x3b5   :  { %v1934_v22 = vmax.f32 %v1918_v7, 0.0  ;;  %v1935_v53 = vmax.f32 %v1919_v51, 0.0 }
 0x3b6   :  { %1948 = vst [vmem:[#allocation8 + $0x30] sm:$0xff] %v1932_v52 }
 0x3b7   :  { %1949 = vst [vmem:[#allocation8 + $0x38] sm:$0xff] %v1933_v54 }
 0x3b8   :  { %1950 = vst [vmem:[#allocation8 + $0x40] sm:$0xff] %v1934_v22 }
 0x3b9   :  { %1951 = vst [vmem:[#allocation8 + $0x48] sm:$0xff] %v1935_v53  ;;  %v1859_v21 = vpop.f32.mrf.mxu2  ;;  %v1888_v36 = vpop.f32.mrf.mxu3 }
 0x3ba   :  { %v1920_v32 = vadd.f32 %v1904_v59, %v1859_v21  ;;  %v1921_v41 = vadd.f32 %v1905_v55, %v1888_v36  ;;  %v1804_v43 = vpop.f32.mrf.mxu0  ;;  %v1833_v49 = vpop.f32.mrf.mxu1 }
 0x3bb   :  { %v1922_v47 = vadd.f32 %v1906_v6, %v1804_v43  ;;  %v1923_v58 = vadd.f32 %v1907_v9, %v1833_v49 }
 0x3bc   :  { %v1936_v63 = vmax.f32 %v1920_v32, 0.0  ;;  %v1937_v31 = vmax.f32 %v1921_v41, 0.0 }
 0x3bd   :  { %v1938_v5 = vmax.f32 %v1922_v47, 0.0  ;;  %v1939_v19 = vmax.f32 %v1923_v58, 0.0 }
 0x3be   :  { %1952 = vst [vmem:[#allocation8 + $0x50] sm:$0xff] %v1936_v63 }
 0x3bf   :  { %1953 = vst [vmem:[#allocation8 + $0x58] sm:$0xff] %v1937_v31 }
 0x3c0   :  { %1954 = vst [vmem:[#allocation8 + $0x60] sm:$0xff] %v1938_v5 }
 0x3c1   :  { %1955 = vst [vmem:[#allocation8 + $0x68] sm:$0xff] %v1939_v19  ;;  %v1862_v13 = vpop.f32.mrf.mxu2  ;;  %v1891_v33 = vpop.f32.mrf.mxu3 }
 0x3c2   :  { %v1924_v20 = vadd.f32 %v1908_v17, %v1862_v13  ;;  %v1925_v28 = vadd.f32 %v1909_v27, %v1891_v33 }
 0x3c4   :  { %v1940_v34 = vmax.f32 %v1924_v20, 0.0  ;;  %v1941_v38 = vmax.f32 %v1925_v28, 0.0 }
 0x3c6   :  { %1956 = vst [vmem:[#allocation8 + $0x70] sm:$0xff] %v1940_v34 }
 0x3c7   :  { %1957 = vst [vmem:[#allocation8 + $0x78] sm:$0xff] %v1941_v38 }
 0x3c8   :  { %1970 = dma.vmem_to_hbm [thread:$0]  %s1963_s28, 2048, %s1965_s8, [#allocation4], %s2155_s9, %s2155_s9, %s2156_s10  }
 0x3c9   :  { %2152 = dma.done.wait [#allocation4], 2048  }
 0x3ca   :  { %2153 = vsyncadd [#allocation4], 4294965248 }
 0x3cb   :  { %1975 = vsyncpa [#allocation3], 1 }
 0x3cc   :  { %1976 = vsyncpa [#allocation6], 1 }
 0x3cd   :  { %1977 = vsyncpa [#allocation4], 1 }

</bundles_post_ra>
